<compile_context>
chip_gen: v6e
topology: v6e:2x2x1
jax: 0.10.0
libtpu: 0.0.40
codegen_flags: <defaults>
</compile_context>

<pallas_src>
import functools
import math

import jax
import jax.numpy as jnp
from jax.experimental import pallas as pl
from jax.experimental.pallas import tpu as pltpu


# ----------------------------- Pallas kernel -------------------------------

def midi_kernel(xe_ref, xd_ref, eps_ref,
                wih_e_ref, whh_e_ref, be_ref,
                w2122_ref, b2122_ref,
                wih_dx_ref, wih_dz_ref, whh_d_ref, bd_ref,
                wf_ref, bf_ref,
                out_ref, mu_ref, logvar_ref,
                hs_sc, *, B, T, I, H, E):
    f32 = jnp.float32
    S = T - 1

    # Recurrent weights stay live across the unrolled loops.
    whh_e = whh_e_ref[...]          # (H, 4H)
    whh_d = whh_d_ref[...]          # (H, 4H)

    def gates_to_hc(gates, c):
        # PyTorch LSTM gate order: i, f, g, o
        i = jax.nn.sigmoid(gates[:, 0 * H:1 * H])
        f = jax.nn.sigmoid(gates[:, 1 * H:2 * H])
        g = jnp.tanh(gates[:, 2 * H:3 * H])
        o = jax.nn.sigmoid(gates[:, 3 * H:4 * H])
        c_new = f * c + i * g
        h_new = o * jnp.tanh(c_new)
        return h_new, c_new

    # -------- encoder: input projection hoisted out of the recurrence -------
    # One ((T-1)*B, I) @ (I, 4H) matmul + bias broadcast, done once.
    enc_proj = (jnp.dot(xe_ref[...], wih_e_ref[...], preferred_element_type=f32)
                + be_ref[...])                                  # (S*B, 4H)

    h = jnp.zeros((B, H), f32)
    c = jnp.zeros((B, H), f32)
    for t in range(S):                       # fully unrolled, static slices
        gates = enc_proj[t * B:(t + 1) * B, :] + jnp.dot(
            h, whh_e, preferred_element_type=f32)
        h, c = gates_to_hc(gates, c)
    h_enc = h

    # -------- fused fc21/fc22 + reparameterize (training mode) --------------
    ml = jnp.dot(h_enc, w2122_ref[...], preferred_element_type=f32) + b2122_ref[...]
    mu = ml[:, :E]
    logvar = ml[:, E:]
    mu_ref[...] = mu
    logvar_ref[...] = logvar
    z = mu + eps_ref[...] * jnp.exp(0.5 * logvar)               # (B, E)

    # -------- decoder: projections hoisted; output head deferred ------------
    # Masked-input projection for all steps in one matmul; z projection (+bias)
    # once since z is constant across time.
    dec_proj = jnp.dot(xd_ref[...], wih_dx_ref[...],
                       preferred_element_type=f32)              # (S*B, 4H)
    zproj = (jnp.dot(z, wih_dz_ref[...], preferred_element_type=f32)
             + bd_ref[...])                                     # (B, 4H)

    h = jnp.zeros((B, H), f32)
    c = jnp.zeros((B, H), f32)
    for t in range(S):
        gates = (dec_proj[t * B:(t + 1) * B, :] + zproj
                 + jnp.dot(h, whh_d, preferred_element_type=f32))
        h, c = gates_to_hc(gates, c)
        # Write-only stash (never read inside the loop -> off the critical path).
        hs_sc[t * B:(t + 1) * B, :] = h

    # One ((T-1)*B, H) @ (H, I) matmul + sigmoid + a single output store.
    out_ref[...] = jax.nn.sigmoid(
        jnp.dot(hs_sc[...], wf_ref[...], preferred_element_type=f32) + bf_ref[...])


# ------------------------------ wrapper -------------------------------------

def run_midi_kernel(x_enc_flat, x_dec_flat, eps, p, *, B, T, I, H, E):
    """Inputs are already time-major & flattened: ((T-1)*B, I)."""
    S = T - 1
    kernel = functools.partial(midi_kernel, B=B, T=T, I=I, H=H, E=E)
    n_in = 14
    # TODO(synk): for production batch sizes, add a batch grid with
    # dimension_semantics=("parallel",) so v7x megacore can split sequences
    # across both TensorCores; at B=2 it would only add per-step overhead.
    return pl.pallas_call(
        kernel,
        out_shape=(jax.ShapeDtypeStruct((S * B, I), jnp.float32),
                   jax.ShapeDtypeStruct((B, E), jnp.float32),
                   jax.ShapeDtypeStruct((B, E), jnp.float32)),
        in_specs=[pl.BlockSpec(memory_space=pltpu.MemorySpace.VMEM)
                  for _ in range(n_in)],
        out_specs=(pl.BlockSpec(memory_space=pltpu.MemorySpace.VMEM),
                   pl.BlockSpec(memory_space=pltpu.MemorySpace.VMEM),
                   pl.BlockSpec(memory_space=pltpu.MemorySpace.VMEM)),
        scratch_shapes=[pltpu.VMEM((S * B, H), jnp.float32)],
    )(x_enc_flat, x_dec_flat, eps,
      p["wih_enc"], p["whh_enc"], p["b_enc"],
      p["w2122"], p["b2122"],
      p["wih_dec_x"], p["wih_dec_z"], p["whh_dec"], p["b_dec"],
      p["wf"], p["bf"])


@functools.partial(jax.jit, static_argnames=("input_size", "hidden_size",
                                             "embedding_size", "sequence_length"))
def midi_forward(x, params, rng_key, *, input_size, hidden_size,
                 embedding_size, sequence_length):
    """Full MIDI.forward (training-mode semantics, fresh hidden state)."""
    B, T, I = x.shape
    E, H = embedding_size, hidden_size
    S = T - 1

    k_eps, k_mask = jax.random.split(rng_key)
    eps = jax.random.normal(k_eps, (B, E), dtype=jnp.float32)
    # Bernoulli(0.2) input-drop mask, drawn for all T steps (matches reference).
    mask = (jax.random.uniform(k_mask, (B, T)) < 0.2).astype(jnp.float32)

    # Encoder input: x[:, 1:, :] -> time-major -> flat ((T-1)*B, I).
    x_enc = jnp.transpose(x[:, 1:, :], (1, 0, 2)).reshape(S * B, I)
    # Decoder input: (1 - mask) * x, first T-1 steps, time-major, flat.
    x_dec = (1.0 - mask[:, :S, None]) * x[:, :S, :]
    x_dec = jnp.transpose(x_dec, (1, 0, 2)).reshape(S * B, I)

    out_flat, mu, logvar = run_midi_kernel(x_enc, x_dec, eps, params,
                                           B=B, T=T, I=I, H=H, E=E)
    out = jnp.transpose(out_flat.reshape(S, B, I), (1, 0, 2))   # (B, T-1, I)
    return out, mu, logvar


# -------------------------- parameter construction -------------------------

def init_params(key, input_size, hidden_size, embedding_size):
    """Deterministic init mirroring PyTorch default U(-1/sqrt(fan), 1/sqrt(fan)),
    packed for the kernel: weights pre-transposed to [in, out], LSTM biases
    pre-summed, fc21/fc22 fused, decoder W_ih split into x / z parts."""
    I, H, E = input_size, hidden_size, embedding_size
    D = I + E
    ks = jax.random.split(key, 14)
    u = lambda k, shape, bound: jax.random.uniform(
        k, shape, jnp.float32, minval=-bound, maxval=bound)
    kl = 1.0 / math.sqrt(H)

    # encoder LSTM (rnn1)
    enc_wih = u(ks[0], (4 * H, I), kl)
    enc_whh = u(ks[1], (4 * H, H), kl)
    enc_bih = u(ks[2], (4 * H,), kl)
    enc_bhh = u(ks[3], (4 * H,), kl)
    # fc21 / fc22
    w21 = u(ks[4], (E, H), kl); b21 = u(ks[5], (E,), kl)
    w22 = u(ks[6], (E, H), kl); b22 = u(ks[7], (E,), kl)
    # decoder LSTM (drnn1): weight_ih (4H, I+E)
    dec_wih = u(ks[8], (4 * H, D), kl)
    dec_whh = u(ks[9], (4 * H, H), kl)
    dec_bih = u(ks[10], (4 * H,), kl)
    dec_bhh = u(ks[11], (4 * H,), kl)
    # fnn1
    wf = u(ks[12], (I, H), kl); bf = u(ks[13], (I,), kl)

    return {
        "wih_enc": enc_wih.T,                                   # (I, 4H)
        "whh_enc": enc_whh.T,                                   # (H, 4H)
        "b_enc": (enc_bih + enc_bhh).reshape(1, 4 * H),
        "w2122": jnp.concatenate([w21.T, w22.T], axis=1),       # (H, 2E)
        "b2122": jnp.concatenate([b21, b22]).reshape(1, 2 * E),
        "wih_dec_x": dec_wih[:, :I].T,                          # (I, 4H)
        "wih_dec_z": dec_wih[:, I:].T,                          # (E, 4H)
        "whh_dec": dec_whh.T,                                   # (H, 4H)
        "b_dec": (dec_bih + dec_bhh).reshape(1, 4 * H),
        "wf": wf.T,                                             # (H, I)
        "bf": bf.reshape(1, I),
    }


# ------------------------------ pure-JAX reference --------------------------

def _lstm_ref(x_tm, w, b, H):
    T, B, _ = x_tm.shape
    hi = jax.lax.Precision.HIGHEST

    def step(carry, xt):
        h, c = carry
        g = jnp.dot(jnp.concatenate([xt, h], axis=1), w, precision=hi) + b
        i = jax.nn.sigmoid(g[:, :H]); f = jax.nn.sigmoid(g[:, H:2 * H])
        gg = jnp.tanh(g[:, 2 * H:3 * H]); o = jax.nn.sigmoid(g[:, 3 * H:])
        c = f * c + i * gg
        h = o * jnp.tanh(c)
        return (h, c), h

    (h, _), hs = jax.lax.scan(step, (jnp.zeros((B, H)), jnp.zeros((B, H))), x_tm)
    return hs, h


def midi_forward_ref(x, p, rng_key, *, input_size, hidden_size,
                     embedding_size, sequence_length):
    B, T, I = x.shape
    H, E = hidden_size, embedding_size
    hi = jax.lax.Precision.HIGHEST

    k_eps, k_mask = jax.random.split(rng_key)
    eps = jax.random.normal(k_eps, (B, E), dtype=jnp.float32)
    mask = (jax.random.uniform(k_mask, (B, T)) < 0.2).astype(jnp.float32)

    enc_w = jnp.concatenate([p["wih_enc"], p["whh_enc"]], axis=0)
    dec_w = jnp.concatenate([p["wih_dec_x"], p["wih_dec_z"], p["whh_dec"]], axis=0)

    x_enc_tm = jnp.transpose(x[:, 1:, :], (1, 0, 2))
    _, h_last = _lstm_ref(x_enc_tm, enc_w, p["b_enc"], H)
    mu = jnp.dot(h_last, p["w2122"][:, :E], precision=hi) + p["b2122"][:, :E]
    logvar = jnp.dot(h_last, p["w2122"][:, E:], precision=hi) + p["b2122"][:, E:]
    z = mu + eps * jnp.exp(0.5 * logvar)
    z_rep = jnp.broadcast_to(z[:, None, :], (B, T - 1, E))
    xm = (1.0 - mask[:, :, None]) * x
    zx_tm = jnp.transpose(jnp.concatenate([xm[:, :-1, :], z_rep], axis=2), (1, 0, 2))
    hs, _ = _lstm_ref(zx_tm, dec_w, p["b_dec"], H)
    out_tm = jax.nn.sigmoid(jnp.einsum("tbh,hi->tbi", hs, p["wf"],
                                       precision=hi) + p["bf"])
    return jnp.transpose(out_tm, (1, 0, 2)), mu, logvar


# ---------------------------------- main ------------------------------------

if __name__ == "__main__":
    INPUT_SIZE = 16
    HIDDEN_SIZE = 32
    EMBEDDING_SIZE = 8
    SEQUENCE_LENGTH = 8
    BATCH = 2

    key = jax.random.PRNGKey(0)
    k_param, k_data, k_fwd = jax.random.split(key, 3)

    params = init_params(k_param, INPUT_SIZE, HIDDEN_SIZE, EMBEDDING_SIZE)
    x = jax.random.uniform(k_data, (BATCH, SEQUENCE_LENGTH, INPUT_SIZE),
                           dtype=jnp.float32)

    cfg = dict(input_size=INPUT_SIZE, hidden_size=HIDDEN_SIZE,
               embedding_size=EMBEDDING_SIZE, sequence_length=SEQUENCE_LENGTH)

    out, mu, logvar = midi_forward(x, params, k_fwd, **cfg)
    jax.block_until_ready((out, mu, logvar))

    # Cross-check against a pure-JAX reference (same weights, same RNG draws).
    # Tolerance accepted explicitly: in-kernel f32 matmuls use default MXU
    # precision vs. Precision.HIGHEST in the reference.
    out_r, mu_r, lv_r = midi_forward_ref(x, params, k_fwd, **cfg)
    assert out.shape == (BATCH, SEQUENCE_LENGTH - 1, INPUT_SIZE)
    assert mu.shape == (BATCH, EMBEDDING_SIZE) and logvar.shape == (BATCH, EMBEDDING_SIZE)
    assert jnp.allclose(mu, mu_r, atol=2e-3, rtol=2e-3)
    assert jnp.allclose(logvar, lv_r, atol=2e-3, rtol=2e-3)
    assert jnp.allclose(out, out_r, atol=2e-3, rtol=2e-3)

    print("KERNEL_OK")
</pallas_src>

<mosaic_0001>
module attributes {stable_mosaic.version = 11 : i64} {
  func.func @midi_kernel(%arg0: memref<14x16xf32, #tpu.memory_space<vmem>>, %arg1: memref<14x16xf32, #tpu.memory_space<vmem>>, %arg2: memref<2x8xf32, #tpu.memory_space<vmem>>, %arg3: memref<16x128xf32, #tpu.memory_space<vmem>>, %arg4: memref<32x128xf32, #tpu.memory_space<vmem>>, %arg5: memref<1x128xf32, #tpu.memory_space<vmem>>, %arg6: memref<32x16xf32, #tpu.memory_space<vmem>>, %arg7: memref<1x16xf32, #tpu.memory_space<vmem>>, %arg8: memref<16x128xf32, #tpu.memory_space<vmem>>, %arg9: memref<8x128xf32, #tpu.memory_space<vmem>>, %arg10: memref<32x128xf32, #tpu.memory_space<vmem>>, %arg11: memref<1x128xf32, #tpu.memory_space<vmem>>, %arg12: memref<32x16xf32, #tpu.memory_space<vmem>>, %arg13: memref<1x16xf32, #tpu.memory_space<vmem>>, %arg14: memref<14x16xf32, #tpu.memory_space<vmem>>, %arg15: memref<2x8xf32, #tpu.memory_space<vmem>>, %arg16: memref<2x8xf32, #tpu.memory_space<vmem>>, %arg17: memref<14x32xf32, #tpu.memory_space<vmem>>) attributes {dimension_semantics = [], scalar_prefetch = 0 : i64, scratch_operands = 1 : i64, tpu.core_type = #tpu.core_type<tc>} {
    %c0 = arith.constant 0 : index
    %c0_0 = arith.constant 0 : index
    %0 = vector.load %arg4[%c0, %c0_0] : memref<32x128xf32, #tpu.memory_space<vmem>>, vector<32x128xf32>
    %c0_1 = arith.constant 0 : index
    %c0_2 = arith.constant 0 : index
    %1 = vector.load %arg10[%c0_1, %c0_2] : memref<32x128xf32, #tpu.memory_space<vmem>>, vector<32x128xf32>
    %c0_3 = arith.constant 0 : index
    %c0_4 = arith.constant 0 : index
    %2 = vector.load %arg0[%c0_3, %c0_4] : memref<14x16xf32, #tpu.memory_space<vmem>>, vector<14x16xf32>
    %c0_5 = arith.constant 0 : index
    %c0_6 = arith.constant 0 : index
    %3 = vector.load %arg3[%c0_5, %c0_6] : memref<16x128xf32, #tpu.memory_space<vmem>>, vector<16x128xf32>
    %cst = arith.constant dense<0.000000e+00> : vector<14x128xf32>
    %4 = tpu.matmul %2, %3, %cst {dimension_numbers = #tpu.dot_dimension_numbers<[1], [0], [0], [1], [0, 0, 1, 1], [], []>} : vector<14x16xf32>, vector<16x128xf32>, vector<14x128xf32> -> vector<14x128xf32>
    %c0_7 = arith.constant 0 : index
    %c0_8 = arith.constant 0 : index
    %5 = vector.load %arg5[%c0_7, %c0_8] : memref<1x128xf32, #tpu.memory_space<vmem>>, vector<1x128xf32>
    %6 = vector.broadcast %5 : vector<1x128xf32> to vector<14x128xf32>
    %7 = arith.addf %4, %6 : vector<14x128xf32>
    %cst_9 = arith.constant 0.000000e+00 : f32
    %8 = vector.broadcast %cst_9 : f32 to vector<2x32xf32>
    %cst_10 = arith.constant 0.000000e+00 : f32
    %9 = vector.broadcast %cst_10 : f32 to vector<2x32xf32>
    %10 = vector.extract_strided_slice %7 {offsets = [0, 0], sizes = [2, 128], strides = [1, 1]} : vector<14x128xf32> to vector<2x128xf32>
    %cst_11 = arith.constant dense<0.000000e+00> : vector<2x128xf32>
    %11 = tpu.matmul %8, %0, %cst_11 {dimension_numbers = #tpu.dot_dimension_numbers<[1], [0], [0], [1], [0, 0, 1, 1], [], []>} : vector<2x32xf32>, vector<32x128xf32>, vector<2x128xf32> -> vector<2x128xf32>
    %12 = arith.addf %10, %11 : vector<2x128xf32>
    %13 = vector.extract_strided_slice %12 {offsets = [0, 0], sizes = [2, 32], strides = [1, 1]} : vector<2x128xf32> to vector<2x32xf32>
    %14 = arith.negf %13 : vector<2x32xf32>
    %15 = math.exp %14 : vector<2x32xf32>
    %cst_12 = arith.constant 1.000000e+00 : f32
    %16 = vector.broadcast %cst_12 : f32 to vector<2x32xf32>
    %17 = arith.addf %16, %15 : vector<2x32xf32>
    %18 = arith.divf %16, %17 : vector<2x32xf32>
    %19 = vector.extract_strided_slice %12 {offsets = [0, 32], sizes = [2, 32], strides = [1, 1]} : vector<2x128xf32> to vector<2x32xf32>
    %20 = arith.negf %19 : vector<2x32xf32>
    %21 = math.exp %20 : vector<2x32xf32>
    %cst_13 = arith.constant 1.000000e+00 : f32
    %22 = vector.broadcast %cst_13 : f32 to vector<2x32xf32>
    %23 = arith.addf %22, %21 : vector<2x32xf32>
    %24 = arith.divf %22, %23 : vector<2x32xf32>
    %25 = vector.extract_strided_slice %12 {offsets = [0, 64], sizes = [2, 32], strides = [1, 1]} : vector<2x128xf32> to vector<2x32xf32>
    %26 = math.tanh %25 : vector<2x32xf32>
    %27 = vector.extract_strided_slice %12 {offsets = [0, 96], sizes = [2, 32], strides = [1, 1]} : vector<2x128xf32> to vector<2x32xf32>
    %28 = arith.negf %27 : vector<2x32xf32>
    %29 = math.exp %28 : vector<2x32xf32>
    %cst_14 = arith.constant 1.000000e+00 : f32
    %30 = vector.broadcast %cst_14 : f32 to vector<2x32xf32>
    %31 = arith.addf %30, %29 : vector<2x32xf32>
    %32 = arith.divf %30, %31 : vector<2x32xf32>
    %33 = arith.mulf %24, %9 : vector<2x32xf32>
    %34 = arith.mulf %18, %26 : vector<2x32xf32>
    %35 = arith.addf %33, %34 : vector<2x32xf32>
    %36 = math.tanh %35 : vector<2x32xf32>
    %37 = arith.mulf %32, %36 : vector<2x32xf32>
    %38 = vector.extract_strided_slice %7 {offsets = [2, 0], sizes = [2, 128], strides = [1, 1]} : vector<14x128xf32> to vector<2x128xf32>
    %cst_15 = arith.constant dense<0.000000e+00> : vector<2x128xf32>
    %39 = tpu.matmul %37, %0, %cst_15 {dimension_numbers = #tpu.dot_dimension_numbers<[1], [0], [0], [1], [0, 0, 1, 1], [], []>} : vector<2x32xf32>, vector<32x128xf32>, vector<2x128xf32> -> vector<2x128xf32>
    %40 = arith.addf %38, %39 : vector<2x128xf32>
    %41 = vector.extract_strided_slice %40 {offsets = [0, 0], sizes = [2, 32], strides = [1, 1]} : vector<2x128xf32> to vector<2x32xf32>
    %42 = arith.negf %41 : vector<2x32xf32>
    %43 = math.exp %42 : vector<2x32xf32>
    %cst_16 = arith.constant 1.000000e+00 : f32
    %44 = vector.broadcast %cst_16 : f32 to vector<2x32xf32>
    %45 = arith.addf %44, %43 : vector<2x32xf32>
    %46 = arith.divf %44, %45 : vector<2x32xf32>
    %47 = vector.extract_strided_slice %40 {offsets = [0, 32], sizes = [2, 32], strides = [1, 1]} : vector<2x128xf32> to vector<2x32xf32>
    %48 = arith.negf %47 : vector<2x32xf32>
    %49 = math.exp %48 : vector<2x32xf32>
    %cst_17 = arith.constant 1.000000e+00 : f32
    %50 = vector.broadcast %cst_17 : f32 to vector<2x32xf32>
    %51 = arith.addf %50, %49 : vector<2x32xf32>
    %52 = arith.divf %50, %51 : vector<2x32xf32>
    %53 = vector.extract_strided_slice %40 {offsets = [0, 64], sizes = [2, 32], strides = [1, 1]} : vector<2x128xf32> to vector<2x32xf32>
    %54 = math.tanh %53 : vector<2x32xf32>
    %55 = vector.extract_strided_slice %40 {offsets = [0, 96], sizes = [2, 32], strides = [1, 1]} : vector<2x128xf32> to vector<2x32xf32>
    %56 = arith.negf %55 : vector<2x32xf32>
    %57 = math.exp %56 : vector<2x32xf32>
    %cst_18 = arith.constant 1.000000e+00 : f32
    %58 = vector.broadcast %cst_18 : f32 to vector<2x32xf32>
    %59 = arith.addf %58, %57 : vector<2x32xf32>
    %60 = arith.divf %58, %59 : vector<2x32xf32>
    %61 = arith.mulf %52, %35 : vector<2x32xf32>
    %62 = arith.mulf %46, %54 : vector<2x32xf32>
    %63 = arith.addf %61, %62 : vector<2x32xf32>
    %64 = math.tanh %63 : vector<2x32xf32>
    %65 = arith.mulf %60, %64 : vector<2x32xf32>
    %66 = vector.extract_strided_slice %7 {offsets = [4, 0], sizes = [2, 128], strides = [1, 1]} : vector<14x128xf32> to vector<2x128xf32>
    %cst_19 = arith.constant dense<0.000000e+00> : vector<2x128xf32>
    %67 = tpu.matmul %65, %0, %cst_19 {dimension_numbers = #tpu.dot_dimension_numbers<[1], [0], [0], [1], [0, 0, 1, 1], [], []>} : vector<2x32xf32>, vector<32x128xf32>, vector<2x128xf32> -> vector<2x128xf32>
    %68 = arith.addf %66, %67 : vector<2x128xf32>
    %69 = vector.extract_strided_slice %68 {offsets = [0, 0], sizes = [2, 32], strides = [1, 1]} : vector<2x128xf32> to vector<2x32xf32>
    %70 = arith.negf %69 : vector<2x32xf32>
    %71 = math.exp %70 : vector<2x32xf32>
    %cst_20 = arith.constant 1.000000e+00 : f32
    %72 = vector.broadcast %cst_20 : f32 to vector<2x32xf32>
    %73 = arith.addf %72, %71 : vector<2x32xf32>
    %74 = arith.divf %72, %73 : vector<2x32xf32>
    %75 = vector.extract_strided_slice %68 {offsets = [0, 32], sizes = [2, 32], strides = [1, 1]} : vector<2x128xf32> to vector<2x32xf32>
    %76 = arith.negf %75 : vector<2x32xf32>
    %77 = math.exp %76 : vector<2x32xf32>
    %cst_21 = arith.constant 1.000000e+00 : f32
    %78 = vector.broadcast %cst_21 : f32 to vector<2x32xf32>
    %79 = arith.addf %78, %77 : vector<2x32xf32>
    %80 = arith.divf %78, %79 : vector<2x32xf32>
    %81 = vector.extract_strided_slice %68 {offsets = [0, 64], sizes = [2, 32], strides = [1, 1]} : vector<2x128xf32> to vector<2x32xf32>
    %82 = math.tanh %81 : vector<2x32xf32>
    %83 = vector.extract_strided_slice %68 {offsets = [0, 96], sizes = [2, 32], strides = [1, 1]} : vector<2x128xf32> to vector<2x32xf32>
    %84 = arith.negf %83 : vector<2x32xf32>
    %85 = math.exp %84 : vector<2x32xf32>
    %cst_22 = arith.constant 1.000000e+00 : f32
    %86 = vector.broadcast %cst_22 : f32 to vector<2x32xf32>
    %87 = arith.addf %86, %85 : vector<2x32xf32>
    %88 = arith.divf %86, %87 : vector<2x32xf32>
    %89 = arith.mulf %80, %63 : vector<2x32xf32>
    %90 = arith.mulf %74, %82 : vector<2x32xf32>
    %91 = arith.addf %89, %90 : vector<2x32xf32>
    %92 = math.tanh %91 : vector<2x32xf32>
    %93 = arith.mulf %88, %92 : vector<2x32xf32>
    %94 = vector.extract_strided_slice %7 {offsets = [6, 0], sizes = [2, 128], strides = [1, 1]} : vector<14x128xf32> to vector<2x128xf32>
    %cst_23 = arith.constant dense<0.000000e+00> : vector<2x128xf32>
    %95 = tpu.matmul %93, %0, %cst_23 {dimension_numbers = #tpu.dot_dimension_numbers<[1], [0], [0], [1], [0, 0, 1, 1], [], []>} : vector<2x32xf32>, vector<32x128xf32>, vector<2x128xf32> -> vector<2x128xf32>
    %96 = arith.addf %94, %95 : vector<2x128xf32>
    %97 = vector.extract_strided_slice %96 {offsets = [0, 0], sizes = [2, 32], strides = [1, 1]} : vector<2x128xf32> to vector<2x32xf32>
    %98 = arith.negf %97 : vector<2x32xf32>
    %99 = math.exp %98 : vector<2x32xf32>
    %cst_24 = arith.constant 1.000000e+00 : f32
    %100 = vector.broadcast %cst_24 : f32 to vector<2x32xf32>
    %101 = arith.addf %100, %99 : vector<2x32xf32>
    %102 = arith.divf %100, %101 : vector<2x32xf32>
    %103 = vector.extract_strided_slice %96 {offsets = [0, 32], sizes = [2, 32], strides = [1, 1]} : vector<2x128xf32> to vector<2x32xf32>
    %104 = arith.negf %103 : vector<2x32xf32>
    %105 = math.exp %104 : vector<2x32xf32>
    %cst_25 = arith.constant 1.000000e+00 : f32
    %106 = vector.broadcast %cst_25 : f32 to vector<2x32xf32>
    %107 = arith.addf %106, %105 : vector<2x32xf32>
    %108 = arith.divf %106, %107 : vector<2x32xf32>
    %109 = vector.extract_strided_slice %96 {offsets = [0, 64], sizes = [2, 32], strides = [1, 1]} : vector<2x128xf32> to vector<2x32xf32>
    %110 = math.tanh %109 : vector<2x32xf32>
    %111 = vector.extract_strided_slice %96 {offsets = [0, 96], sizes = [2, 32], strides = [1, 1]} : vector<2x128xf32> to vector<2x32xf32>
    %112 = arith.negf %111 : vector<2x32xf32>
    %113 = math.exp %112 : vector<2x32xf32>
    %cst_26 = arith.constant 1.000000e+00 : f32
    %114 = vector.broadcast %cst_26 : f32 to vector<2x32xf32>
    %115 = arith.addf %114, %113 : vector<2x32xf32>
    %116 = arith.divf %114, %115 : vector<2x32xf32>
    %117 = arith.mulf %108, %91 : vector<2x32xf32>
    %118 = arith.mulf %102, %110 : vector<2x32xf32>
    %119 = arith.addf %117, %118 : vector<2x32xf32>
    %120 = math.tanh %119 : vector<2x32xf32>
    %121 = arith.mulf %116, %120 : vector<2x32xf32>
    %122 = vector.extract_strided_slice %7 {offsets = [8, 0], sizes = [2, 128], strides = [1, 1]} : vector<14x128xf32> to vector<2x128xf32>
    %cst_27 = arith.constant dense<0.000000e+00> : vector<2x128xf32>
    %123 = tpu.matmul %121, %0, %cst_27 {dimension_numbers = #tpu.dot_dimension_numbers<[1], [0], [0], [1], [0, 0, 1, 1], [], []>} : vector<2x32xf32>, vector<32x128xf32>, vector<2x128xf32> -> vector<2x128xf32>
    %124 = arith.addf %122, %123 : vector<2x128xf32>
    %125 = vector.extract_strided_slice %124 {offsets = [0, 0], sizes = [2, 32], strides = [1, 1]} : vector<2x128xf32> to vector<2x32xf32>
    %126 = arith.negf %125 : vector<2x32xf32>
    %127 = math.exp %126 : vector<2x32xf32>
    %cst_28 = arith.constant 1.000000e+00 : f32
    %128 = vector.broadcast %cst_28 : f32 to vector<2x32xf32>
    %129 = arith.addf %128, %127 : vector<2x32xf32>
    %130 = arith.divf %128, %129 : vector<2x32xf32>
    %131 = vector.extract_strided_slice %124 {offsets = [0, 32], sizes = [2, 32], strides = [1, 1]} : vector<2x128xf32> to vector<2x32xf32>
    %132 = arith.negf %131 : vector<2x32xf32>
    %133 = math.exp %132 : vector<2x32xf32>
    %cst_29 = arith.constant 1.000000e+00 : f32
    %134 = vector.broadcast %cst_29 : f32 to vector<2x32xf32>
    %135 = arith.addf %134, %133 : vector<2x32xf32>
    %136 = arith.divf %134, %135 : vector<2x32xf32>
    %137 = vector.extract_strided_slice %124 {offsets = [0, 64], sizes = [2, 32], strides = [1, 1]} : vector<2x128xf32> to vector<2x32xf32>
    %138 = math.tanh %137 : vector<2x32xf32>
    %139 = vector.extract_strided_slice %124 {offsets = [0, 96], sizes = [2, 32], strides = [1, 1]} : vector<2x128xf32> to vector<2x32xf32>
    %140 = arith.negf %139 : vector<2x32xf32>
    %141 = math.exp %140 : vector<2x32xf32>
    %cst_30 = arith.constant 1.000000e+00 : f32
    %142 = vector.broadcast %cst_30 : f32 to vector<2x32xf32>
    %143 = arith.addf %142, %141 : vector<2x32xf32>
    %144 = arith.divf %142, %143 : vector<2x32xf32>
    %145 = arith.mulf %136, %119 : vector<2x32xf32>
    %146 = arith.mulf %130, %138 : vector<2x32xf32>
    %147 = arith.addf %145, %146 : vector<2x32xf32>
    %148 = math.tanh %147 : vector<2x32xf32>
    %149 = arith.mulf %144, %148 : vector<2x32xf32>
    %150 = vector.extract_strided_slice %7 {offsets = [10, 0], sizes = [2, 128], strides = [1, 1]} : vector<14x128xf32> to vector<2x128xf32>
    %cst_31 = arith.constant dense<0.000000e+00> : vector<2x128xf32>
    %151 = tpu.matmul %149, %0, %cst_31 {dimension_numbers = #tpu.dot_dimension_numbers<[1], [0], [0], [1], [0, 0, 1, 1], [], []>} : vector<2x32xf32>, vector<32x128xf32>, vector<2x128xf32> -> vector<2x128xf32>
    %152 = arith.addf %150, %151 : vector<2x128xf32>
    %153 = vector.extract_strided_slice %152 {offsets = [0, 0], sizes = [2, 32], strides = [1, 1]} : vector<2x128xf32> to vector<2x32xf32>
    %154 = arith.negf %153 : vector<2x32xf32>
    %155 = math.exp %154 : vector<2x32xf32>
    %cst_32 = arith.constant 1.000000e+00 : f32
    %156 = vector.broadcast %cst_32 : f32 to vector<2x32xf32>
    %157 = arith.addf %156, %155 : vector<2x32xf32>
    %158 = arith.divf %156, %157 : vector<2x32xf32>
    %159 = vector.extract_strided_slice %152 {offsets = [0, 32], sizes = [2, 32], strides = [1, 1]} : vector<2x128xf32> to vector<2x32xf32>
    %160 = arith.negf %159 : vector<2x32xf32>
    %161 = math.exp %160 : vector<2x32xf32>
    %cst_33 = arith.constant 1.000000e+00 : f32
    %162 = vector.broadcast %cst_33 : f32 to vector<2x32xf32>
    %163 = arith.addf %162, %161 : vector<2x32xf32>
    %164 = arith.divf %162, %163 : vector<2x32xf32>
    %165 = vector.extract_strided_slice %152 {offsets = [0, 64], sizes = [2, 32], strides = [1, 1]} : vector<2x128xf32> to vector<2x32xf32>
    %166 = math.tanh %165 : vector<2x32xf32>
    %167 = vector.extract_strided_slice %152 {offsets = [0, 96], sizes = [2, 32], strides = [1, 1]} : vector<2x128xf32> to vector<2x32xf32>
    %168 = arith.negf %167 : vector<2x32xf32>
    %169 = math.exp %168 : vector<2x32xf32>
    %cst_34 = arith.constant 1.000000e+00 : f32
    %170 = vector.broadcast %cst_34 : f32 to vector<2x32xf32>
    %171 = arith.addf %170, %169 : vector<2x32xf32>
    %172 = arith.divf %170, %171 : vector<2x32xf32>
    %173 = arith.mulf %164, %147 : vector<2x32xf32>
    %174 = arith.mulf %158, %166 : vector<2x32xf32>
    %175 = arith.addf %173, %174 : vector<2x32xf32>
    %176 = math.tanh %175 : vector<2x32xf32>
    %177 = arith.mulf %172, %176 : vector<2x32xf32>
    %178 = vector.extract_strided_slice %7 {offsets = [12, 0], sizes = [2, 128], strides = [1, 1]} : vector<14x128xf32> to vector<2x128xf32>
    %cst_35 = arith.constant dense<0.000000e+00> : vector<2x128xf32>
    %179 = tpu.matmul %177, %0, %cst_35 {dimension_numbers = #tpu.dot_dimension_numbers<[1], [0], [0], [1], [0, 0, 1, 1], [], []>} : vector<2x32xf32>, vector<32x128xf32>, vector<2x128xf32> -> vector<2x128xf32>
    %180 = arith.addf %178, %179 : vector<2x128xf32>
    %181 = vector.extract_strided_slice %180 {offsets = [0, 0], sizes = [2, 32], strides = [1, 1]} : vector<2x128xf32> to vector<2x32xf32>
    %182 = arith.negf %181 : vector<2x32xf32>
    %183 = math.exp %182 : vector<2x32xf32>
    %cst_36 = arith.constant 1.000000e+00 : f32
    %184 = vector.broadcast %cst_36 : f32 to vector<2x32xf32>
    %185 = arith.addf %184, %183 : vector<2x32xf32>
    %186 = arith.divf %184, %185 : vector<2x32xf32>
    %187 = vector.extract_strided_slice %180 {offsets = [0, 32], sizes = [2, 32], strides = [1, 1]} : vector<2x128xf32> to vector<2x32xf32>
    %188 = arith.negf %187 : vector<2x32xf32>
    %189 = math.exp %188 : vector<2x32xf32>
    %cst_37 = arith.constant 1.000000e+00 : f32
    %190 = vector.broadcast %cst_37 : f32 to vector<2x32xf32>
    %191 = arith.addf %190, %189 : vector<2x32xf32>
    %192 = arith.divf %190, %191 : vector<2x32xf32>
    %193 = vector.extract_strided_slice %180 {offsets = [0, 64], sizes = [2, 32], strides = [1, 1]} : vector<2x128xf32> to vector<2x32xf32>
    %194 = math.tanh %193 : vector<2x32xf32>
    %195 = vector.extract_strided_slice %180 {offsets = [0, 96], sizes = [2, 32], strides = [1, 1]} : vector<2x128xf32> to vector<2x32xf32>
    %196 = arith.negf %195 : vector<2x32xf32>
    %197 = math.exp %196 : vector<2x32xf32>
    %cst_38 = arith.constant 1.000000e+00 : f32
    %198 = vector.broadcast %cst_38 : f32 to vector<2x32xf32>
    %199 = arith.addf %198, %197 : vector<2x32xf32>
    %200 = arith.divf %198, %199 : vector<2x32xf32>
    %201 = arith.mulf %192, %175 : vector<2x32xf32>
    %202 = arith.mulf %186, %194 : vector<2x32xf32>
    %203 = arith.addf %201, %202 : vector<2x32xf32>
    %204 = math.tanh %203 : vector<2x32xf32>
    %205 = arith.mulf %200, %204 : vector<2x32xf32>
    %c0_39 = arith.constant 0 : index
    %c0_40 = arith.constant 0 : index
    %206 = vector.load %arg6[%c0_39, %c0_40] : memref<32x16xf32, #tpu.memory_space<vmem>>, vector<32x16xf32>
    %cst_41 = arith.constant dense<0.000000e+00> : vector<2x16xf32>
    %207 = tpu.matmul %205, %206, %cst_41 {dimension_numbers = #tpu.dot_dimension_numbers<[1], [0], [0], [1], [0, 0, 1, 1], [], []>} : vector<2x32xf32>, vector<32x16xf32>, vector<2x16xf32> -> vector<2x16xf32>
    %c0_42 = arith.constant 0 : index
    %c0_43 = arith.constant 0 : index
    %208 = vector.load %arg7[%c0_42, %c0_43] : memref<1x16xf32, #tpu.memory_space<vmem>>, vector<1x16xf32>
    %209 = vector.broadcast %208 : vector<1x16xf32> to vector<2x16xf32>
    %210 = arith.addf %207, %209 : vector<2x16xf32>
    %211 = vector.extract_strided_slice %210 {offsets = [0, 0], sizes = [2, 8], strides = [1, 1]} : vector<2x16xf32> to vector<2x8xf32>
    %212 = vector.extract_strided_slice %210 {offsets = [0, 8], sizes = [2, 8], strides = [1, 1]} : vector<2x16xf32> to vector<2x8xf32>
    %c0_44 = arith.constant 0 : index
    %c0_45 = arith.constant 0 : index
    %213 = vector.load %arg15[%c0_44, %c0_45] : memref<2x8xf32, #tpu.memory_space<vmem>>, vector<2x8xf32>
    tpu.vector_store %arg15[%c0_44, %c0_45], %211 {strides = array<i32>} : memref<2x8xf32, #tpu.memory_space<vmem>>, vector<2x8xf32>,
    %c0_46 = arith.constant 0 : index
    %c0_47 = arith.constant 0 : index
    %214 = vector.load %arg16[%c0_46, %c0_47] : memref<2x8xf32, #tpu.memory_space<vmem>>, vector<2x8xf32>
    tpu.vector_store %arg16[%c0_46, %c0_47], %212 {strides = array<i32>} : memref<2x8xf32, #tpu.memory_space<vmem>>, vector<2x8xf32>,
    %c0_48 = arith.constant 0 : index
    %c0_49 = arith.constant 0 : index
    %215 = vector.load %arg2[%c0_48, %c0_49] : memref<2x8xf32, #tpu.memory_space<vmem>>, vector<2x8xf32>
    %cst_50 = arith.constant 5.000000e-01 : f32
    %216 = vector.broadcast %cst_50 : f32 to vector<2x8xf32>
    %217 = arith.mulf %216, %212 : vector<2x8xf32>
    %218 = math.exp %217 : vector<2x8xf32>
    %219 = arith.mulf %215, %218 : vector<2x8xf32>
    %220 = arith.addf %211, %219 : vector<2x8xf32>
    %c0_51 = arith.constant 0 : index
    %c0_52 = arith.constant 0 : index
    %221 = vector.load %arg1[%c0_51, %c0_52] : memref<14x16xf32, #tpu.memory_space<vmem>>, vector<14x16xf32>
    %c0_53 = arith.constant 0 : index
    %c0_54 = arith.constant 0 : index
    %222 = vector.load %arg8[%c0_53, %c0_54] : memref<16x128xf32, #tpu.memory_space<vmem>>, vector<16x128xf32>
    %cst_55 = arith.constant dense<0.000000e+00> : vector<14x128xf32>
    %223 = tpu.matmul %221, %222, %cst_55 {dimension_numbers = #tpu.dot_dimension_numbers<[1], [0], [0], [1], [0, 0, 1, 1], [], []>} : vector<14x16xf32>, vector<16x128xf32>, vector<14x128xf32> -> vector<14x128xf32>
    %c0_56 = arith.constant 0 : index
    %c0_57 = arith.constant 0 : index
    %224 = vector.load %arg9[%c0_56, %c0_57] : memref<8x128xf32, #tpu.memory_space<vmem>>, vector<8x128xf32>
    %cst_58 = arith.constant dense<0.000000e+00> : vector<2x128xf32>
    %225 = tpu.matmul %220, %224, %cst_58 {dimension_numbers = #tpu.dot_dimension_numbers<[1], [0], [0], [1], [0, 0, 1, 1], [], []>} : vector<2x8xf32>, vector<8x128xf32>, vector<2x128xf32> -> vector<2x128xf32>
    %c0_59 = arith.constant 0 : index
    %c0_60 = arith.constant 0 : index
    %226 = vector.load %arg11[%c0_59, %c0_60] : memref<1x128xf32, #tpu.memory_space<vmem>>, vector<1x128xf32>
    %227 = vector.broadcast %226 : vector<1x128xf32> to vector<2x128xf32>
    %228 = arith.addf %225, %227 : vector<2x128xf32>
    %cst_61 = arith.constant 0.000000e+00 : f32
    %229 = vector.broadcast %cst_61 : f32 to vector<2x32xf32>
    %cst_62 = arith.constant 0.000000e+00 : f32
    %230 = vector.broadcast %cst_62 : f32 to vector<2x32xf32>
    %231 = vector.extract_strided_slice %223 {offsets = [0, 0], sizes = [2, 128], strides = [1, 1]} : vector<14x128xf32> to vector<2x128xf32>
    %232 = arith.addf %231, %228 : vector<2x128xf32>
    %cst_63 = arith.constant dense<0.000000e+00> : vector<2x128xf32>
    %233 = tpu.matmul %229, %1, %cst_63 {dimension_numbers = #tpu.dot_dimension_numbers<[1], [0], [0], [1], [0, 0, 1, 1], [], []>} : vector<2x32xf32>, vector<32x128xf32>, vector<2x128xf32> -> vector<2x128xf32>
    %234 = arith.addf %232, %233 : vector<2x128xf32>
    %235 = vector.extract_strided_slice %234 {offsets = [0, 0], sizes = [2, 32], strides = [1, 1]} : vector<2x128xf32> to vector<2x32xf32>
    %236 = arith.negf %235 : vector<2x32xf32>
    %237 = math.exp %236 : vector<2x32xf32>
    %cst_64 = arith.constant 1.000000e+00 : f32
    %238 = vector.broadcast %cst_64 : f32 to vector<2x32xf32>
    %239 = arith.addf %238, %237 : vector<2x32xf32>
    %240 = arith.divf %238, %239 : vector<2x32xf32>
    %241 = vector.extract_strided_slice %234 {offsets = [0, 32], sizes = [2, 32], strides = [1, 1]} : vector<2x128xf32> to vector<2x32xf32>
    %242 = arith.negf %241 : vector<2x32xf32>
    %243 = math.exp %242 : vector<2x32xf32>
    %cst_65 = arith.constant 1.000000e+00 : f32
    %244 = vector.broadcast %cst_65 : f32 to vector<2x32xf32>
    %245 = arith.addf %244, %243 : vector<2x32xf32>
    %246 = arith.divf %244, %245 : vector<2x32xf32>
    %247 = vector.extract_strided_slice %234 {offsets = [0, 64], sizes = [2, 32], strides = [1, 1]} : vector<2x128xf32> to vector<2x32xf32>
    %248 = math.tanh %247 : vector<2x32xf32>
    %249 = vector.extract_strided_slice %234 {offsets = [0, 96], sizes = [2, 32], strides = [1, 1]} : vector<2x128xf32> to vector<2x32xf32>
    %250 = arith.negf %249 : vector<2x32xf32>
    %251 = math.exp %250 : vector<2x32xf32>
    %cst_66 = arith.constant 1.000000e+00 : f32
    %252 = vector.broadcast %cst_66 : f32 to vector<2x32xf32>
    %253 = arith.addf %252, %251 : vector<2x32xf32>
    %254 = arith.divf %252, %253 : vector<2x32xf32>
    %255 = arith.mulf %246, %230 : vector<2x32xf32>
    %256 = arith.mulf %240, %248 : vector<2x32xf32>
    %257 = arith.addf %255, %256 : vector<2x32xf32>
    %258 = math.tanh %257 : vector<2x32xf32>
    %259 = arith.mulf %254, %258 : vector<2x32xf32>
    %c0_67 = arith.constant 0 : index
    %c0_68 = arith.constant 0 : index
    %260 = vector.load %arg17[%c0_67, %c0_68] : memref<14x32xf32, #tpu.memory_space<vmem>>, vector<2x32xf32>
    tpu.vector_store %arg17[%c0_67, %c0_68], %259 {strides = array<i32>} : memref<14x32xf32, #tpu.memory_space<vmem>>, vector<2x32xf32>,
    %261 = vector.extract_strided_slice %223 {offsets = [2, 0], sizes = [2, 128], strides = [1, 1]} : vector<14x128xf32> to vector<2x128xf32>
    %262 = arith.addf %261, %228 : vector<2x128xf32>
    %cst_69 = arith.constant dense<0.000000e+00> : vector<2x128xf32>
    %263 = tpu.matmul %259, %1, %cst_69 {dimension_numbers = #tpu.dot_dimension_numbers<[1], [0], [0], [1], [0, 0, 1, 1], [], []>} : vector<2x32xf32>, vector<32x128xf32>, vector<2x128xf32> -> vector<2x128xf32>
    %264 = arith.addf %262, %263 : vector<2x128xf32>
    %265 = vector.extract_strided_slice %264 {offsets = [0, 0], sizes = [2, 32], strides = [1, 1]} : vector<2x128xf32> to vector<2x32xf32>
    %266 = arith.negf %265 : vector<2x32xf32>
    %267 = math.exp %266 : vector<2x32xf32>
    %cst_70 = arith.constant 1.000000e+00 : f32
    %268 = vector.broadcast %cst_70 : f32 to vector<2x32xf32>
    %269 = arith.addf %268, %267 : vector<2x32xf32>
    %270 = arith.divf %268, %269 : vector<2x32xf32>
    %271 = vector.extract_strided_slice %264 {offsets = [0, 32], sizes = [2, 32], strides = [1, 1]} : vector<2x128xf32> to vector<2x32xf32>
    %272 = arith.negf %271 : vector<2x32xf32>
    %273 = math.exp %272 : vector<2x32xf32>
    %cst_71 = arith.constant 1.000000e+00 : f32
    %274 = vector.broadcast %cst_71 : f32 to vector<2x32xf32>
    %275 = arith.addf %274, %273 : vector<2x32xf32>
    %276 = arith.divf %274, %275 : vector<2x32xf32>
    %277 = vector.extract_strided_slice %264 {offsets = [0, 64], sizes = [2, 32], strides = [1, 1]} : vector<2x128xf32> to vector<2x32xf32>
    %278 = math.tanh %277 : vector<2x32xf32>
    %279 = vector.extract_strided_slice %264 {offsets = [0, 96], sizes = [2, 32], strides = [1, 1]} : vector<2x128xf32> to vector<2x32xf32>
    %280 = arith.negf %279 : vector<2x32xf32>
    %281 = math.exp %280 : vector<2x32xf32>
    %cst_72 = arith.constant 1.000000e+00 : f32
    %282 = vector.broadcast %cst_72 : f32 to vector<2x32xf32>
    %283 = arith.addf %282, %281 : vector<2x32xf32>
    %284 = arith.divf %282, %283 : vector<2x32xf32>
    %285 = arith.mulf %276, %257 : vector<2x32xf32>
    %286 = arith.mulf %270, %278 : vector<2x32xf32>
    %287 = arith.addf %285, %286 : vector<2x32xf32>
    %288 = math.tanh %287 : vector<2x32xf32>
    %289 = arith.mulf %284, %288 : vector<2x32xf32>
    %c2 = arith.constant 2 : index
    %c0_73 = arith.constant 0 : index
    %290 = vector.load %arg17[%c2, %c0_73] : memref<14x32xf32, #tpu.memory_space<vmem>>, vector<2x32xf32>
    tpu.vector_store %arg17[%c2, %c0_73], %289 {strides = array<i32>} : memref<14x32xf32, #tpu.memory_space<vmem>>, vector<2x32xf32>,
    %291 = vector.extract_strided_slice %223 {offsets = [4, 0], sizes = [2, 128], strides = [1, 1]} : vector<14x128xf32> to vector<2x128xf32>
    %292 = arith.addf %291, %228 : vector<2x128xf32>
    %cst_74 = arith.constant dense<0.000000e+00> : vector<2x128xf32>
    %293 = tpu.matmul %289, %1, %cst_74 {dimension_numbers = #tpu.dot_dimension_numbers<[1], [0], [0], [1], [0, 0, 1, 1], [], []>} : vector<2x32xf32>, vector<32x128xf32>, vector<2x128xf32> -> vector<2x128xf32>
    %294 = arith.addf %292, %293 : vector<2x128xf32>
    %295 = vector.extract_strided_slice %294 {offsets = [0, 0], sizes = [2, 32], strides = [1, 1]} : vector<2x128xf32> to vector<2x32xf32>
    %296 = arith.negf %295 : vector<2x32xf32>
    %297 = math.exp %296 : vector<2x32xf32>
    %cst_75 = arith.constant 1.000000e+00 : f32
    %298 = vector.broadcast %cst_75 : f32 to vector<2x32xf32>
    %299 = arith.addf %298, %297 : vector<2x32xf32>
    %300 = arith.divf %298, %299 : vector<2x32xf32>
    %301 = vector.extract_strided_slice %294 {offsets = [0, 32], sizes = [2, 32], strides = [1, 1]} : vector<2x128xf32> to vector<2x32xf32>
    %302 = arith.negf %301 : vector<2x32xf32>
    %303 = math.exp %302 : vector<2x32xf32>
    %cst_76 = arith.constant 1.000000e+00 : f32
    %304 = vector.broadcast %cst_76 : f32 to vector<2x32xf32>
    %305 = arith.addf %304, %303 : vector<2x32xf32>
    %306 = arith.divf %304, %305 : vector<2x32xf32>
    %307 = vector.extract_strided_slice %294 {offsets = [0, 64], sizes = [2, 32], strides = [1, 1]} : vector<2x128xf32> to vector<2x32xf32>
    %308 = math.tanh %307 : vector<2x32xf32>
    %309 = vector.extract_strided_slice %294 {offsets = [0, 96], sizes = [2, 32], strides = [1, 1]} : vector<2x128xf32> to vector<2x32xf32>
    %310 = arith.negf %309 : vector<2x32xf32>
    %311 = math.exp %310 : vector<2x32xf32>
    %cst_77 = arith.constant 1.000000e+00 : f32
    %312 = vector.broadcast %cst_77 : f32 to vector<2x32xf32>
    %313 = arith.addf %312, %311 : vector<2x32xf32>
    %314 = arith.divf %312, %313 : vector<2x32xf32>
    %315 = arith.mulf %306, %287 : vector<2x32xf32>
    %316 = arith.mulf %300, %308 : vector<2x32xf32>
    %317 = arith.addf %315, %316 : vector<2x32xf32>
    %318 = math.tanh %317 : vector<2x32xf32>
    %319 = arith.mulf %314, %318 : vector<2x32xf32>
    %c4 = arith.constant 4 : index
    %c0_78 = arith.constant 0 : index
    %320 = vector.load %arg17[%c4, %c0_78] : memref<14x32xf32, #tpu.memory_space<vmem>>, vector<2x32xf32>
    tpu.vector_store %arg17[%c4, %c0_78], %319 {strides = array<i32>} : memref<14x32xf32, #tpu.memory_space<vmem>>, vector<2x32xf32>,
    %321 = vector.extract_strided_slice %223 {offsets = [6, 0], sizes = [2, 128], strides = [1, 1]} : vector<14x128xf32> to vector<2x128xf32>
    %322 = arith.addf %321, %228 : vector<2x128xf32>
    %cst_79 = arith.constant dense<0.000000e+00> : vector<2x128xf32>
    %323 = tpu.matmul %319, %1, %cst_79 {dimension_numbers = #tpu.dot_dimension_numbers<[1], [0], [0], [1], [0, 0, 1, 1], [], []>} : vector<2x32xf32>, vector<32x128xf32>, vector<2x128xf32> -> vector<2x128xf32>
    %324 = arith.addf %322, %323 : vector<2x128xf32>
    %325 = vector.extract_strided_slice %324 {offsets = [0, 0], sizes = [2, 32], strides = [1, 1]} : vector<2x128xf32> to vector<2x32xf32>
    %326 = arith.negf %325 : vector<2x32xf32>
    %327 = math.exp %326 : vector<2x32xf32>
    %cst_80 = arith.constant 1.000000e+00 : f32
    %328 = vector.broadcast %cst_80 : f32 to vector<2x32xf32>
    %329 = arith.addf %328, %327 : vector<2x32xf32>
    %330 = arith.divf %328, %329 : vector<2x32xf32>
    %331 = vector.extract_strided_slice %324 {offsets = [0, 32], sizes = [2, 32], strides = [1, 1]} : vector<2x128xf32> to vector<2x32xf32>
    %332 = arith.negf %331 : vector<2x32xf32>
    %333 = math.exp %332 : vector<2x32xf32>
    %cst_81 = arith.constant 1.000000e+00 : f32
    %334 = vector.broadcast %cst_81 : f32 to vector<2x32xf32>
    %335 = arith.addf %334, %333 : vector<2x32xf32>
    %336 = arith.divf %334, %335 : vector<2x32xf32>
    %337 = vector.extract_strided_slice %324 {offsets = [0, 64], sizes = [2, 32], strides = [1, 1]} : vector<2x128xf32> to vector<2x32xf32>
    %338 = math.tanh %337 : vector<2x32xf32>
    %339 = vector.extract_strided_slice %324 {offsets = [0, 96], sizes = [2, 32], strides = [1, 1]} : vector<2x128xf32> to vector<2x32xf32>
    %340 = arith.negf %339 : vector<2x32xf32>
    %341 = math.exp %340 : vector<2x32xf32>
    %cst_82 = arith.constant 1.000000e+00 : f32
    %342 = vector.broadcast %cst_82 : f32 to vector<2x32xf32>
    %343 = arith.addf %342, %341 : vector<2x32xf32>
    %344 = arith.divf %342, %343 : vector<2x32xf32>
    %345 = arith.mulf %336, %317 : vector<2x32xf32>
    %346 = arith.mulf %330, %338 : vector<2x32xf32>
    %347 = arith.addf %345, %346 : vector<2x32xf32>
    %348 = math.tanh %347 : vector<2x32xf32>
    %349 = arith.mulf %344, %348 : vector<2x32xf32>
    %c6 = arith.constant 6 : index
    %c0_83 = arith.constant 0 : index
    %350 = vector.load %arg17[%c6, %c0_83] : memref<14x32xf32, #tpu.memory_space<vmem>>, vector<2x32xf32>
    tpu.vector_store %arg17[%c6, %c0_83], %349 {strides = array<i32>} : memref<14x32xf32, #tpu.memory_space<vmem>>, vector<2x32xf32>,
    %351 = vector.extract_strided_slice %223 {offsets = [8, 0], sizes = [2, 128], strides = [1, 1]} : vector<14x128xf32> to vector<2x128xf32>
    %352 = arith.addf %351, %228 : vector<2x128xf32>
    %cst_84 = arith.constant dense<0.000000e+00> : vector<2x128xf32>
    %353 = tpu.matmul %349, %1, %cst_84 {dimension_numbers = #tpu.dot_dimension_numbers<[1], [0], [0], [1], [0, 0, 1, 1], [], []>} : vector<2x32xf32>, vector<32x128xf32>, vector<2x128xf32> -> vector<2x128xf32>
    %354 = arith.addf %352, %353 : vector<2x128xf32>
    %355 = vector.extract_strided_slice %354 {offsets = [0, 0], sizes = [2, 32], strides = [1, 1]} : vector<2x128xf32> to vector<2x32xf32>
    %356 = arith.negf %355 : vector<2x32xf32>
    %357 = math.exp %356 : vector<2x32xf32>
    %cst_85 = arith.constant 1.000000e+00 : f32
    %358 = vector.broadcast %cst_85 : f32 to vector<2x32xf32>
    %359 = arith.addf %358, %357 : vector<2x32xf32>
    %360 = arith.divf %358, %359 : vector<2x32xf32>
    %361 = vector.extract_strided_slice %354 {offsets = [0, 32], sizes = [2, 32], strides = [1, 1]} : vector<2x128xf32> to vector<2x32xf32>
    %362 = arith.negf %361 : vector<2x32xf32>
    %363 = math.exp %362 : vector<2x32xf32>
    %cst_86 = arith.constant 1.000000e+00 : f32
    %364 = vector.broadcast %cst_86 : f32 to vector<2x32xf32>
    %365 = arith.addf %364, %363 : vector<2x32xf32>
    %366 = arith.divf %364, %365 : vector<2x32xf32>
    %367 = vector.extract_strided_slice %354 {offsets = [0, 64], sizes = [2, 32], strides = [1, 1]} : vector<2x128xf32> to vector<2x32xf32>
    %368 = math.tanh %367 : vector<2x32xf32>
    %369 = vector.extract_strided_slice %354 {offsets = [0, 96], sizes = [2, 32], strides = [1, 1]} : vector<2x128xf32> to vector<2x32xf32>
    %370 = arith.negf %369 : vector<2x32xf32>
    %371 = math.exp %370 : vector<2x32xf32>
    %cst_87 = arith.constant 1.000000e+00 : f32
    %372 = vector.broadcast %cst_87 : f32 to vector<2x32xf32>
    %373 = arith.addf %372, %371 : vector<2x32xf32>
    %374 = arith.divf %372, %373 : vector<2x32xf32>
    %375 = arith.mulf %366, %347 : vector<2x32xf32>
    %376 = arith.mulf %360, %368 : vector<2x32xf32>
    %377 = arith.addf %375, %376 : vector<2x32xf32>
    %378 = math.tanh %377 : vector<2x32xf32>
    %379 = arith.mulf %374, %378 : vector<2x32xf32>
    %c8 = arith.constant 8 : index
    %c0_88 = arith.constant 0 : index
    %380 = vector.load %arg17[%c8, %c0_88] : memref<14x32xf32, #tpu.memory_space<vmem>>, vector<2x32xf32>
    tpu.vector_store %arg17[%c8, %c0_88], %379 {strides = array<i32>} : memref<14x32xf32, #tpu.memory_space<vmem>>, vector<2x32xf32>,
    %381 = vector.extract_strided_slice %223 {offsets = [10, 0], sizes = [2, 128], strides = [1, 1]} : vector<14x128xf32> to vector<2x128xf32>
    %382 = arith.addf %381, %228 : vector<2x128xf32>
    %cst_89 = arith.constant dense<0.000000e+00> : vector<2x128xf32>
    %383 = tpu.matmul %379, %1, %cst_89 {dimension_numbers = #tpu.dot_dimension_numbers<[1], [0], [0], [1], [0, 0, 1, 1], [], []>} : vector<2x32xf32>, vector<32x128xf32>, vector<2x128xf32> -> vector<2x128xf32>
    %384 = arith.addf %382, %383 : vector<2x128xf32>
    %385 = vector.extract_strided_slice %384 {offsets = [0, 0], sizes = [2, 32], strides = [1, 1]} : vector<2x128xf32> to vector<2x32xf32>
    %386 = arith.negf %385 : vector<2x32xf32>
    %387 = math.exp %386 : vector<2x32xf32>
    %cst_90 = arith.constant 1.000000e+00 : f32
    %388 = vector.broadcast %cst_90 : f32 to vector<2x32xf32>
    %389 = arith.addf %388, %387 : vector<2x32xf32>
    %390 = arith.divf %388, %389 : vector<2x32xf32>
    %391 = vector.extract_strided_slice %384 {offsets = [0, 32], sizes = [2, 32], strides = [1, 1]} : vector<2x128xf32> to vector<2x32xf32>
    %392 = arith.negf %391 : vector<2x32xf32>
    %393 = math.exp %392 : vector<2x32xf32>
    %cst_91 = arith.constant 1.000000e+00 : f32
    %394 = vector.broadcast %cst_91 : f32 to vector<2x32xf32>
    %395 = arith.addf %394, %393 : vector<2x32xf32>
    %396 = arith.divf %394, %395 : vector<2x32xf32>
    %397 = vector.extract_strided_slice %384 {offsets = [0, 64], sizes = [2, 32], strides = [1, 1]} : vector<2x128xf32> to vector<2x32xf32>
    %398 = math.tanh %397 : vector<2x32xf32>
    %399 = vector.extract_strided_slice %384 {offsets = [0, 96], sizes = [2, 32], strides = [1, 1]} : vector<2x128xf32> to vector<2x32xf32>
    %400 = arith.negf %399 : vector<2x32xf32>
    %401 = math.exp %400 : vector<2x32xf32>
    %cst_92 = arith.constant 1.000000e+00 : f32
    %402 = vector.broadcast %cst_92 : f32 to vector<2x32xf32>
    %403 = arith.addf %402, %401 : vector<2x32xf32>
    %404 = arith.divf %402, %403 : vector<2x32xf32>
    %405 = arith.mulf %396, %377 : vector<2x32xf32>
    %406 = arith.mulf %390, %398 : vector<2x32xf32>
    %407 = arith.addf %405, %406 : vector<2x32xf32>
    %408 = math.tanh %407 : vector<2x32xf32>
    %409 = arith.mulf %404, %408 : vector<2x32xf32>
    %c10 = arith.constant 10 : index
    %c0_93 = arith.constant 0 : index
    %410 = vector.load %arg17[%c10, %c0_93] : memref<14x32xf32, #tpu.memory_space<vmem>>, vector<2x32xf32>
    tpu.vector_store %arg17[%c10, %c0_93], %409 {strides = array<i32>} : memref<14x32xf32, #tpu.memory_space<vmem>>, vector<2x32xf32>,
    %411 = vector.extract_strided_slice %223 {offsets = [12, 0], sizes = [2, 128], strides = [1, 1]} : vector<14x128xf32> to vector<2x128xf32>
    %412 = arith.addf %411, %228 : vector<2x128xf32>
    %cst_94 = arith.constant dense<0.000000e+00> : vector<2x128xf32>
    %413 = tpu.matmul %409, %1, %cst_94 {dimension_numbers = #tpu.dot_dimension_numbers<[1], [0], [0], [1], [0, 0, 1, 1], [], []>} : vector<2x32xf32>, vector<32x128xf32>, vector<2x128xf32> -> vector<2x128xf32>
    %414 = arith.addf %412, %413 : vector<2x128xf32>
    %415 = vector.extract_strided_slice %414 {offsets = [0, 0], sizes = [2, 32], strides = [1, 1]} : vector<2x128xf32> to vector<2x32xf32>
    %416 = arith.negf %415 : vector<2x32xf32>
    %417 = math.exp %416 : vector<2x32xf32>
    %cst_95 = arith.constant 1.000000e+00 : f32
    %418 = vector.broadcast %cst_95 : f32 to vector<2x32xf32>
    %419 = arith.addf %418, %417 : vector<2x32xf32>
    %420 = arith.divf %418, %419 : vector<2x32xf32>
    %421 = vector.extract_strided_slice %414 {offsets = [0, 32], sizes = [2, 32], strides = [1, 1]} : vector<2x128xf32> to vector<2x32xf32>
    %422 = arith.negf %421 : vector<2x32xf32>
    %423 = math.exp %422 : vector<2x32xf32>
    %cst_96 = arith.constant 1.000000e+00 : f32
    %424 = vector.broadcast %cst_96 : f32 to vector<2x32xf32>
    %425 = arith.addf %424, %423 : vector<2x32xf32>
    %426 = arith.divf %424, %425 : vector<2x32xf32>
    %427 = vector.extract_strided_slice %414 {offsets = [0, 64], sizes = [2, 32], strides = [1, 1]} : vector<2x128xf32> to vector<2x32xf32>
    %428 = math.tanh %427 : vector<2x32xf32>
    %429 = vector.extract_strided_slice %414 {offsets = [0, 96], sizes = [2, 32], strides = [1, 1]} : vector<2x128xf32> to vector<2x32xf32>
    %430 = arith.negf %429 : vector<2x32xf32>
    %431 = math.exp %430 : vector<2x32xf32>
    %cst_97 = arith.constant 1.000000e+00 : f32
    %432 = vector.broadcast %cst_97 : f32 to vector<2x32xf32>
    %433 = arith.addf %432, %431 : vector<2x32xf32>
    %434 = arith.divf %432, %433 : vector<2x32xf32>
    %435 = arith.mulf %426, %407 : vector<2x32xf32>
    %436 = arith.mulf %420, %428 : vector<2x32xf32>
    %437 = arith.addf %435, %436 : vector<2x32xf32>
    %438 = math.tanh %437 : vector<2x32xf32>
    %439 = arith.mulf %434, %438 : vector<2x32xf32>
    %c12 = arith.constant 12 : index
    %c0_98 = arith.constant 0 : index
    %440 = vector.load %arg17[%c12, %c0_98] : memref<14x32xf32, #tpu.memory_space<vmem>>, vector<2x32xf32>
    tpu.vector_store %arg17[%c12, %c0_98], %439 {strides = array<i32>} : memref<14x32xf32, #tpu.memory_space<vmem>>, vector<2x32xf32>,
    %c0_99 = arith.constant 0 : index
    %c0_100 = arith.constant 0 : index
    %441 = vector.load %arg17[%c0_99, %c0_100] : memref<14x32xf32, #tpu.memory_space<vmem>>, vector<14x32xf32>
    %c0_101 = arith.constant 0 : index
    %c0_102 = arith.constant 0 : index
    %442 = vector.load %arg12[%c0_101, %c0_102] : memref<32x16xf32, #tpu.memory_space<vmem>>, vector<32x16xf32>
    %cst_103 = arith.constant dense<0.000000e+00> : vector<14x16xf32>
    %443 = tpu.matmul %441, %442, %cst_103 {dimension_numbers = #tpu.dot_dimension_numbers<[1], [0], [0], [1], [0, 0, 1, 1], [], []>} : vector<14x32xf32>, vector<32x16xf32>, vector<14x16xf32> -> vector<14x16xf32>
    %c0_104 = arith.constant 0 : index
    %c0_105 = arith.constant 0 : index
    %444 = vector.load %arg13[%c0_104, %c0_105] : memref<1x16xf32, #tpu.memory_space<vmem>>, vector<1x16xf32>
    %445 = vector.broadcast %444 : vector<1x16xf32> to vector<14x16xf32>
    %446 = arith.addf %443, %445 : vector<14x16xf32>
    %447 = arith.negf %446 : vector<14x16xf32>
    %448 = math.exp %447 : vector<14x16xf32>
    %cst_106 = arith.constant 1.000000e+00 : f32
    %449 = vector.broadcast %cst_106 : f32 to vector<14x16xf32>
    %450 = arith.addf %449, %448 : vector<14x16xf32>
    %451 = arith.divf %449, %450 : vector<14x16xf32>
    %c0_107 = arith.constant 0 : index
    %c0_108 = arith.constant 0 : index
    %452 = vector.load %arg14[%c0_107, %c0_108] : memref<14x16xf32, #tpu.memory_space<vmem>>, vector<14x16xf32>
    tpu.vector_store %arg14[%c0_107, %c0_108], %451 {strides = array<i32>} : memref<14x16xf32, #tpu.memory_space<vmem>>, vector<14x16xf32>,
    return
  }
}

</mosaic_0001>

<bundles_post_ra>
// kernel: midi_forward.3
= control target key start
LH: loop header
LB: loop body
LE: loop exit
PB: predicated region body
PF: predicated region fallthrough
CT: control target
= control target key end

     0   :  { %s3079_s0 = inlined_call_operand.vmem [shape: f32[14,16], index: 0, kind: input, shape index: {}]   ;;  %s3080_s1 = inlined_call_operand.vmem [shape: f32[14,16], index: 1, kind: input, shape index: {}]   ;;  %s3081_s2 = inlined_call_operand.vmem [shape: f32[2,8], index: 2, kind: input, shape index: {}]   ;;  %s3082_s3 = inlined_call_operand.vmem [shape: f32[16,128], index: 3, kind: input, shape index: {}]   ;;  %s3083_s4 = inlined_call_operand.vmem [shape: f32[32,128], index: 4, kind: input, shape index: {}]   ;;  %s3084_s5 = inlined_call_operand.vmem [shape: f32[1,128], index: 5, kind: input, shape index: {}]   ;;  %s3085_s6 = inlined_call_operand.vmem [shape: f32[32,16], index: 6, kind: input, shape index: {}]   ;;  %s3086_s7 = inlined_call_operand.vmem [shape: f32[1,16], index: 7, kind: input, shape index: {}]   ;;  %s3087_s8 = inlined_call_operand.vmem [shape: f32[16,128], index: 8, kind: input, shape index: {}]   ;;  %s3088_s9 = inlined_call_operand.vmem [shape: f32[8,128], index: 9, kind: input, shape index: {}]   ;;  %s3089_s10 = inlined_call_operand.vmem [shape: f32[32,128], index: 10, kind: input, shape index: {}]   ;;  %s3090_s11 = inlined_call_operand.vmem [shape: f32[1,128], index: 11, kind: input, shape index: {}]   ;;  %s3091_s12 = inlined_call_operand.vmem [shape: f32[32,16], index: 12, kind: input, shape index: {}]   ;;  %s3092_s13 = inlined_call_operand.vmem [shape: f32[1,16], index: 13, kind: input, shape index: {}]   ;;  %s3093_s14 = inlined_call_operand.vmem [shape: f32[14,16], index: 14, kind: output, shape index: {0}]   ;;  %s3094_s15 = inlined_call_operand.hbm [shape: f32[2,8], index: 15, kind: output, shape index: {1}]   ;;  %s3095_s16 = inlined_call_operand.hbm [shape: f32[2,8], index: 16, kind: output, shape index: {2}]  }
   0x1   :  { %3097 = sst [smem:[#allocation9_spill]] %s3079_s0 }
   0x2   :  { %22 = vsyncpa [#allocation4], 0  ;;  %v63_v0 = vld [vmem:[%s3082_s3 + $0x8] sm:$0xff]  ;;  %v2673_v1 = vld [vmem:[%s3083_s4 + $0x18] sm:$0xff]  ;;  %v2575_v3 = vmov 0.0   ;;  %s3098_s29 = sld [smem:[#allocation9_spill]] }
   0x3   :  { %v62_v2 = vld [vmem:[%s3082_s3] sm:$0xff]  ;;  %2207 = vmatprep.subr.mxu0 %v63_v0  ;;  %2214 = vmatprep.subr.mxu1 %v2575_v3  ;;  %vm71_vm0 = vcmask 130048   ;;  %v2686_v5 = vld [vmem:[%s3083_s4 + $0x10] sm:$0xff] }
   0x4   :  { %2208 = vmatpush3.msra.mxu0 %v63_v0  ;;  %2215 = vmatpush3.msra.mxu1 %v2673_v1 }
   0x8   :  { %v60_v4 = vld [vmem:[%s3098_s29] sm:$0xff]  ;;  %v61_v6 = vld [vmem:[%s3098_s29 + $0x8] sm:$0x3f] }
   0x9   :  { %23 = vsyncpa [#allocation6], 0  ;;  %2209 = vmatprep.subr.mxu0 %v62_v2  ;;  %2216 = vmatprep.subr.mxu1 %v2575_v3  ;;  %v2696_v7 = vld [vmem:[%s3083_s4 + $0x8] sm:$0xff]  ;;  %v2704_v8 = vld [vmem:[%s3083_s4] sm:$0xff]  ;;  %vm2576_vm1 = vmmov 0   ;;  %s2577_s23 = smov 64  }
   0xa   :  { %2210 = vmatpush3.msra.mxu0 %v62_v2  ;;  %2211 = vmatprep.mubr.msk.f32.mxu0 %vm71_vm0, %v60_v4  ;;  %v2076_v9 = vld [vmem:[%s3084_s5] ss:$0 sm:$0xff]  ;;  %s2578_s5 = smov 32   ;;  %vm153_vm2 = vcmask 261120   ;;  %vm976_vm3 = vcmask 58368   ;;  %vm1086_vm4 = vcmask 64512  }
   0xb   :  { %2217 = vmatpush3.msra.mxu1 %v2686_v5  ;;  %2212 = vmatmul.mubr.msk.f32.vlgmr.msra.gmra.mxu0 %vm71_vm0, %v61_v6  ;;  %vm1260_vm5 = vcmask 254976   ;;  %vm1373_vm6 = vcmask 257026   ;;  %vm1603_vm7 = vcmask 261126   ;;  %vm1488_vm8 = vcmask 259076   ;;  %s2581_s24 = smov [#allocation5]  }
   0xc   :  { %2218 = vmatprep.subr.mxu1 %v2575_v3  ;;  %2222 = vmatprep.mubr.msk.f32.mxu1 %vm2576_vm1, %v2575_v3 }
   0xd   :  { %2219 = vmatpush3.msra.mxu1 %v2696_v7  ;;  %2225 = vmatprep.subr.mxu0 %v2575_v3 }
   0xe   :  { %2220 = vmatprep.subr.mxu1 %v2575_v3  ;;  %2226 = vmatpush3.msra.mxu0 %v2673_v1 }
   0xf   :  { %2221 = vmatpush3.msra.mxu1 %v2704_v8  ;;  %2227 = vmatprep.subr.mxu0 %v2575_v3 }
  0x10   :  { %2223 = vmatmul.mubr.f32.vlgmr.msra.gmra.mxu1 %v2575_v3  ;;  %2228 = vmatpush3.msra.mxu0 %v2686_v5 }
  0x11   :  { %2229 = vmatprep.subr.mxu0 %v2575_v3  ;;  %2233 = vmatprep.mubr.msk.f32.mxu0 %vm2576_vm1, %v2575_v3 }
  0x12   :  { %2230 = vmatpush3.msra.mxu0 %v2696_v7  ;;  %2236 = vmatprep.subr.mxu1 %v2575_v3 }
  0x13   :  { %2231 = vmatprep.subr.mxu0 %v2575_v3  ;;  %2237 = vmatpush3.msra.mxu1 %v2673_v1 }
  0x14   :  { %2232 = vmatpush3.msra.mxu0 %v2704_v8  ;;  %2238 = vmatprep.subr.mxu1 %v2575_v3 }
  0x15   :  { %2239 = vmatpush3.msra.mxu1 %v2686_v5  ;;  %2244 = vmatprep.mubr.msk.f32.mxu1 %vm2576_vm1, %v2575_v3 }
  0x16   :  { %2240 = vmatprep.subr.mxu1 %v2575_v3  ;;  %2247 = vmatprep.subr.mxu0 %v2575_v3 }
  0x17   :  { %2241 = vmatpush3.msra.mxu1 %v2696_v7 }
  0x18   :  { %2242 = vmatprep.subr.mxu1 %v2575_v3 }
  0x19   :  { %2243 = vmatpush3.msra.mxu1 %v2704_v8 }
  0x1a   :  { %2258 = vmatprep.subr.mxu1 %v2575_v3 }
  0xcb   :  { %v2213_v10 = vpop.f32.mrf.mxu0 }
  0xcc   :  { %v2737_v11 = vadd.f32 %v2213_v10, %v2076_v9 }
  0xcd   :  { %v144_v12 = vpop.f32.mrf.mxu0 }
  0xce   :  { %v2739_v13 = vadd.f32 %v2076_v9, %v144_v12 }
  0xd0   :  { %v223_v14 = vpop.f32.mrf.mxu1 }
  0xd1   :  { %v227_v15 = vadd.f32 %v223_v14, %v2739_v13 }
  0xd2   :  { %v2224_v16 = vpop.f32.mrf.mxu1 }
  0xd3   :  { %2409 = vtanh.f32 %v227_v15  ;;  %v2079_v18 = vmul.f32 -1.442695, %v227_v15 }
  0xd5   :  { %2411 = vpow2.f32 %v2079_v18 }
  0xe0   :  { %v2410_v17 = vpop.eup %2409 }
  0xe1   :  { %237 = vrot.lane.b32.xlu0 %v2410_v17, %s2577_s23 }
  0xe2   :  { %v2412_v19 = vpop.eup %2411 }
  0xe3   :  { %v231_v20 = vadd.f32 1.0, %v2412_v19 }
  0xe5   :  { %2413 = vrcp.f32 %v231_v20 }
  0xf2   :  { %v2414_v21 = vpop.eup %2413 }
  0xf3   :  { %v235_v24 = vmul.f32 0.0, %v2414_v21 }
 0x153   :  { %v238_v22 = vpop.permute.xlu0 %237 }
 0x154   :  { %v240_v23 = vmul.f32 %v2414_v21, %v238_v22 }
 0x156   :  { %242 = vrot.lane.b32.xlu0 %v240_v23, %s2578_s5 }
 0x1c8   :  { %v243_v25 = vpop.permute.xlu0 %242 }
 0x1c9   :  { %v245_v26 = vadd.f32 %v243_v25, %v235_v24 }
 0x1cb   :  { %2415 = vtanh.f32 %v245_v26  ;;  %v339_v42 = vrot.slane %v245_v26, 6 }
 0x1d8   :  { %v2416_v27 = vpop.eup %2415 }
 0x1d9   :  { %248 = vrot.lane.b32.xlu1 %v2416_v27, %s2577_s23 }
 0x24b   :  { %v249_v28 = vpop.permute.xlu1 %248 }
 0x24c   :  { %v251_v29 = vmul.f32 %v2414_v21, %v249_v28 }
 0x24e   :  { %253 = vrot.lane.b32.xlu1 %v251_v29, %s2578_s5 }
 0x2c0   :  { %v254_v30 = vpop.permute.xlu1 %253 }
 0x2c1   :  { %2234 = vmatmul.mubr.msk.f32.vlgmr.msra.gmra.mxu0 %vm153_vm2, %v254_v30 }
 0x2c2   :  { %2248 = vmatpush3.msra.mxu0 %v2673_v1  ;;  %2255 = vmatprep.mubr.msk.f32.mxu0 %vm2576_vm1, %v2575_v3 }
 0x2c3   :  { %2249 = vmatprep.subr.mxu0 %v2575_v3 }
 0x2c4   :  { %2250 = vmatpush3.msra.mxu0 %v2686_v5 }
 0x2c5   :  { %2251 = vmatprep.subr.mxu0 %v2575_v3 }
 0x2c6   :  { %2252 = vmatpush3.msra.mxu0 %v2696_v7 }
 0x2c7   :  { %2253 = vmatprep.subr.mxu0 %v2575_v3 }
 0x2c8   :  { %2254 = vmatpush3.msra.mxu0 %v2704_v8 }
 0x2c9   :  { %2269 = vmatprep.subr.mxu0 %v2575_v3 }
 0x381   :  { %v323_v31 = vpop.f32.mrf.mxu0 }
 0x382   :  { %v328_v32 = vrot.slane %v323_v31, 6 }
 0x383   :  { %v2235_v33 = vpop.f32.mrf.mxu0 }
 0x384   :  { %v330_v34 = vadd.f32 %v328_v32, %v2739_v13 }
 0x386   :  { %2417 = vtanh.f32 %v330_v34  ;;  %v2081_v36 = vmul.f32 -1.442695, %v330_v34 }
 0x388   :  { %2419 = vpow2.f32 %v2081_v36 }
 0x393   :  { %v2418_v35 = vpop.eup %2417 }
 0x394   :  { %343 = vrot.lane.b32.xlu0 %v2418_v35, %s2577_s23 }
 0x395   :  { %v2420_v37 = vpop.eup %2419 }
 0x396   :  { %v334_v38 = vadd.f32 1.0, %v2420_v37 }
 0x398   :  { %2421 = vrcp.f32 %v334_v38 }
 0x3a5   :  { %v2422_v39 = vpop.eup %2421 }
 0x3a6   :  { %v341_v43 = vmul.f32 %v2422_v39, %v339_v42 }
 0x406   :  { %v344_v40 = vpop.permute.xlu0 %343 }
 0x407   :  { %v346_v41 = vmul.f32 %v2422_v39, %v344_v40 }
 0x409   :  { %348 = vrot.lane.b32.xlu1 %v346_v41, %s2578_s5 }
 0x47b   :  { %v349_v44 = vpop.permute.xlu1 %348 }
 0x47c   :  { %v351_v45 = vadd.f32 %v349_v44, %v341_v43 }
 0x47e   :  { %2423 = vtanh.f32 %v351_v45  ;;  %v446_v62 = vrot.slane %v351_v45, 6 }
 0x48b   :  { %v2424_v46 = vpop.eup %2423 }
 0x48c   :  { %354 = vrot.lane.b32.xlu0 %v2424_v46, %s2577_s23 }
 0x4fe   :  { %v355_v47 = vpop.permute.xlu0 %354 }
 0x4ff   :  { %v357_v48 = vmul.f32 %v2422_v39, %v355_v47 }
 0x501   :  { %v359_v49 = vrot.slane %v357_v48, 2 }
 0x503   :  { %360 = vrot.lane.b32.xlu1 %v359_v49, %s2578_s5 }
 0x575   :  { %v361_v50 = vpop.permute.xlu1 %360 }
 0x576   :  { %2245 = vmatmul.mubr.msk.f32.vlgmr.msra.gmra.mxu1 %vm153_vm2, %v361_v50 }
 0x577   :  { %2259 = vmatpush3.msra.mxu1 %v2673_v1  ;;  %2266 = vmatprep.mubr.msk.f32.mxu1 %vm2576_vm1, %v2575_v3 }
 0x578   :  { %2260 = vmatprep.subr.mxu1 %v2575_v3 }
 0x579   :  { %2261 = vmatpush3.msra.mxu1 %v2686_v5 }
 0x57a   :  { %2262 = vmatprep.subr.mxu1 %v2575_v3 }
 0x57b   :  { %2263 = vmatpush3.msra.mxu1 %v2696_v7 }
 0x57c   :  { %2264 = vmatprep.subr.mxu1 %v2575_v3 }
 0x57d   :  { %2265 = vmatpush3.msra.mxu1 %v2704_v8 }
 0x57e   :  { %2280 = vmatprep.subr.mxu1 %v2575_v3 }
 0x636   :  { %v430_v51 = vpop.f32.mrf.mxu1 }
 0x637   :  { %v435_v52 = vrot.slane %v430_v51, 4 }
 0x638   :  { %v2246_v53 = vpop.f32.mrf.mxu1 }
 0x639   :  { %v437_v54 = vadd.f32 %v435_v52, %v2739_v13 }
 0x63b   :  { %2425 = vtanh.f32 %v437_v54  ;;  %v2083_v56 = vmul.f32 -1.442695, %v437_v54 }
 0x63d   :  { %2427 = vpow2.f32 %v2083_v56 }
 0x648   :  { %v2426_v55 = vpop.eup %2425 }
 0x649   :  { %450 = vrot.lane.b32.xlu0 %v2426_v55, %s2577_s23 }
 0x64a   :  { %v2428_v57 = vpop.eup %2427 }
 0x64b   :  { %v441_v58 = vadd.f32 1.0, %v2428_v57 }
 0x64d   :  { %2429 = vrcp.f32 %v441_v58 }
 0x65a   :  { %v2430_v59 = vpop.eup %2429 }
 0x65b   :  { %v448_v63 = vmul.f32 %v2430_v59, %v446_v62 }
 0x6bb   :  { %v451_v60 = vpop.permute.xlu0 %450 }
 0x6bc   :  { %v453_v61 = vmul.f32 %v2430_v59, %v451_v60 }
 0x6be   :  { %455 = vrot.lane.b32.xlu1 %v453_v61, %s2578_s5 }
 0x730   :  { %v456_v0 = vpop.permute.xlu1 %455 }
 0x731   :  { %v458_v2 = vadd.f32 %v456_v0, %v448_v63 }
 0x733   :  { %2431 = vtanh.f32 %v458_v2  ;;  %v553_v25 = vrot.slane %v458_v2, 6 }
 0x740   :  { %v2432_v4 = vpop.eup %2431 }
 0x741   :  { %461 = vrot.lane.b32.xlu0 %v2432_v4, %s2577_s23 }
 0x7b3   :  { %v462_v6 = vpop.permute.xlu0 %461 }
 0x7b4   :  { %v464_v9 = vmul.f32 %v2430_v59, %v462_v6 }
 0x7b6   :  { %v466_v10 = vrot.slane %v464_v9, 4 }
 0x7b8   :  { %467 = vrot.lane.b32.xlu1 %v466_v10, %s2578_s5 }
 0x82a   :  { %v468_v12 = vpop.permute.xlu1 %467 }
 0x82b   :  { %2256 = vmatmul.mubr.msk.f32.vlgmr.msra.gmra.mxu0 %vm153_vm2, %v468_v12 }
 0x82c   :  { %2270 = vmatpush3.msra.mxu0 %v2673_v1  ;;  %2277 = vmatprep.mubr.msk.f32.mxu0 %vm2576_vm1, %v2575_v3 }
 0x82d   :  { %2271 = vmatprep.subr.mxu0 %v2575_v3 }
 0x82e   :  { %2272 = vmatpush3.msra.mxu0 %v2686_v5 }
 0x82f   :  { %2273 = vmatprep.subr.mxu0 %v2575_v3 }
 0x830   :  { %2274 = vmatpush3.msra.mxu0 %v2696_v7 }
 0x831   :  { %2275 = vmatprep.subr.mxu0 %v2575_v3 }
 0x832   :  { %2276 = vmatpush3.msra.mxu0 %v2704_v8 }
 0x833   :  { %2291 = vmatprep.subr.mxu0 %v2575_v3 }
 0x8eb   :  { %v537_v14 = vpop.f32.mrf.mxu0 }
 0x8ec   :  { %v542_v15 = vrot.slane %v537_v14, 2 }
 0x8ed   :  { %v2257_v16 = vpop.f32.mrf.mxu0 }
 0x8ee   :  { %v544_v17 = vadd.f32 %v542_v15, %v2739_v13 }
 0x8f0   :  { %2433 = vtanh.f32 %v544_v17  ;;  %v2085_v19 = vmul.f32 -1.442695, %v544_v17 }
 0x8f2   :  { %2435 = vpow2.f32 %v2085_v19 }
 0x8fd   :  { %v2434_v18 = vpop.eup %2433 }
 0x8fe   :  { %557 = vrot.lane.b32.xlu0 %v2434_v18, %s2577_s23 }
 0x8ff   :  { %v2436_v20 = vpop.eup %2435 }
 0x900   :  { %v548_v21 = vadd.f32 1.0, %v2436_v20 }
 0x902   :  { %2437 = vrcp.f32 %v548_v21 }
 0x90f   :  { %v2438_v22 = vpop.eup %2437 }
 0x910   :  { %v555_v26 = vmul.f32 %v2438_v22, %v553_v25  ;;  %v891_v25 = vld [vmem:[%s3085_s6 + $0x10] sm:$0xff] }
 0x970   :  { %v558_v23 = vpop.permute.xlu0 %557 }
 0x971   :  { %v560_v24 = vmul.f32 %v2438_v22, %v558_v23 }
 0x973   :  { %562 = vrot.lane.b32.xlu1 %v560_v24, %s2578_s5 }
 0x9e5   :  { %v563_v27 = vpop.permute.xlu1 %562 }
 0x9e6   :  { %v565_v28 = vadd.f32 %v563_v27, %v555_v26  ;;  %v890_v26 = vld [vmem:[%s3085_s6 + $0x8] sm:$0xff]  ;;  %v889_v27 = vld [vmem:[%s3085_s6] sm:$0xff] }
 0x9e8   :  { %2439 = vtanh.f32 %v565_v28  ;;  %v657_v40 = vrot.slane %v565_v28, 6 }
 0x9f5   :  { %v2440_v13 = vpop.eup %2439 }
 0x9f6   :  { %568 = vrot.lane.b32.xlu0 %v2440_v13, %s2577_s23 }
 0xa68   :  { %v569_v29 = vpop.permute.xlu0 %568 }
 0xa69   :  { %v571_v30 = vmul.f32 %v2438_v22, %v569_v29 }
 0xa6b   :  { %v573_v31 = vrot.slane %v571_v30, 6 }
 0xa6d   :  { %574 = vrot.lane.b32.xlu1 %v573_v31, %s2578_s5 }
 0xadf   :  { %v575_v32 = vpop.permute.xlu1 %574 }
 0xae0   :  { %2267 = vmatmul.mubr.msk.f32.vlgmr.msra.gmra.mxu1 %vm153_vm2, %v575_v32  ;;  %v996_v32 = vld [vmem:[%s3087_s8 + $0x8] sm:$0xff] }
 0xae1   :  { %2281 = vmatpush3.msra.mxu1 %v2673_v1  ;;  %2288 = vmatprep.mubr.msk.f32.mxu1 %vm2576_vm1, %v2575_v3 }
 0xae2   :  { %2282 = vmatprep.subr.mxu1 %v2575_v3 }
 0xae3   :  { %2283 = vmatpush3.msra.mxu1 %v2686_v5 }
 0xae4   :  { %2284 = vmatprep.subr.mxu1 %v2575_v3 }
 0xae5   :  { %2285 = vmatpush3.msra.mxu1 %v2696_v7 }
 0xae6   :  { %2286 = vmatprep.subr.mxu1 %v2575_v3 }
 0xae7   :  { %2287 = vmatpush3.msra.mxu1 %v2704_v8 }
 0xae8   :  { %2302 = vmatprep.subr.mxu1 %v996_v32 }
 0xba0   :  { %v644_v33 = vpop.f32.mrf.mxu1 }
 0xba1   :  { %v648_v34 = vadd.f32 %v644_v33, %v2737_v11  ;;  %v995_v33 = vld [vmem:[%s3087_s8] sm:$0xff] }
 0xba2   :  { %v2268_v35 = vpop.f32.mrf.mxu1 }
 0xba3   :  { %2441 = vtanh.f32 %v648_v34  ;;  %v2087_v36 = vmul.f32 -1.442695, %v648_v34  ;;  %v993_v34 = vld [vmem:[%s3080_s1] sm:$0xff]  ;;  %v994_v35 = vld [vmem:[%s3080_s1 + $0x8] sm:$0x3f] }
 0xba5   :  { %2443 = vpow2.f32 %v2087_v36  ;;  %v2092_v36 = vld [vmem:[%s3086_s7] ss:$0 sm:$0xff] }
 0xbb0   :  { %v2442_v1 = vpop.eup %2441 }
 0xbb1   :  { %661 = vrot.lane.b32.xlu0 %v2442_v1, %s2577_s23  ;;  %v2858_v1 = vld [vmem:[%s3089_s10 + $0x18] sm:$0xff] }
 0xbb2   :  { %v2444_v37 = vpop.eup %2443 }
 0xbb3   :  { %v652_v5 = vadd.f32 1.0, %v2444_v37 }
 0xbb5   :  { %2445 = vrcp.f32 %v652_v5 }
 0xbc2   :  { %v2446_v38 = vpop.eup %2445 }
 0xbc3   :  { %v659_v8 = vmul.f32 %v2446_v38, %v657_v40  ;;  %v2877_v40 = vld [vmem:[%s3089_s10 + $0x10] sm:$0xff] }
 0xc23   :  { %v662_v39 = vpop.permute.xlu0 %661 }
 0xc24   :  { %v664_v7 = vmul.f32 %v2446_v38, %v662_v39 }
 0xc26   :  { %666 = vrot.lane.b32.xlu1 %v664_v7, %s2578_s5 }
 0xc98   :  { %v667_v41 = vpop.permute.xlu1 %666 }
 0xc99   :  { %v669_v42 = vadd.f32 %v667_v41, %v659_v8  ;;  %v1078_v8 = vld [vmem:[%s3088_s9] sm:$0xff]  ;;  %v2887_v41 = vld [vmem:[%s3089_s10 + $0x8] sm:$0xff]  ;;  %s2579_s9 = smov 120  }
 0xc9b   :  { %2447 = vtanh.f32 %v669_v42  ;;  %v763_v58 = vrot.slane %v669_v42, 6  ;;  %v2894_v42 = vld [vmem:[%s3089_s10] sm:$0xff] }
 0xca8   :  { %v2448_v43 = vpop.eup %2447 }
 0xca9   :  { %672 = vrot.lane.b32.xlu0 %v2448_v43, %s2577_s23 }
 0xd1b   :  { %v673_v44 = vpop.permute.xlu0 %672 }
 0xd1c   :  { %v675_v45 = vmul.f32 %v2446_v38, %v673_v44  ;;  %v983_v44 = vld [vmem:[%s3081_s2] sm:$0x3] }
 0xd1e   :  { %677 = vrot.lane.b32.xlu1 %v675_v45, %s2578_s5 }
 0xd90   :  { %v678_v46 = vpop.permute.xlu1 %677 }
 0xd91   :  { %2278 = vmatmul.mubr.msk.f32.vlgmr.msra.gmra.mxu0 %vm153_vm2, %v678_v46 }
 0xd92   :  { %2299 = vmatprep.mubr.msk.f32.mxu0 %vm2576_vm1, %v2575_v3 }
 0xe51   :  { %v747_v47 = vpop.f32.mrf.mxu0 }
 0xe52   :  { %v752_v48 = vrot.slane %v747_v47, 6 }
 0xe53   :  { %v2279_v49 = vpop.f32.mrf.mxu0 }
 0xe54   :  { %v754_v50 = vadd.f32 %v752_v48, %v2737_v11 }
 0xe56   :  { %2449 = vtanh.f32 %v754_v50  ;;  %v2089_v52 = vmul.f32 -1.442695, %v754_v50 }
 0xe58   :  { %2451 = vpow2.f32 %v2089_v52  ;;  %v2096_v52 = vld [vmem:[%s3090_s11] ss:$0 sm:$0xff] }
 0xe63   :  { %v2450_v51 = vpop.eup %2449 }
 0xe64   :  { %767 = vrot.lane.b32.xlu0 %v2450_v51, %s2577_s23 }
 0xe65   :  { %v2452_v53 = vpop.eup %2451 }
 0xe66   :  { %v758_v54 = vadd.f32 1.0, %v2452_v53 }
 0xe68   :  { %2453 = vrcp.f32 %v758_v54 }
 0xe75   :  { %v2454_v55 = vpop.eup %2453 }
 0xe76   :  { %v765_v59 = vmul.f32 %v2454_v55, %v763_v58 }
 0xed6   :  { %v768_v56 = vpop.permute.xlu0 %767 }
 0xed7   :  { %v770_v57 = vmul.f32 %v2454_v55, %v768_v56 }
 0xed9   :  { %772 = vrot.lane.b32.xlu1 %v770_v57, %s2578_s5 }
 0xf4b   :  { %v773_v60 = vpop.permute.xlu1 %772 }
 0xf4c   :  { %v775_v61 = vadd.f32 %v773_v60, %v765_v59 }
 0xf4e   :  { %2455 = vtanh.f32 %v775_v61  ;;  %v870_v21 = vrot.slane %v775_v61, 6 }
 0xf5b   :  { %v2456_v62 = vpop.eup %2455 }
 0xf5c   :  { %778 = vrot.lane.b32.xlu0 %v2456_v62, %s2577_s23 }
 0xfce   :  { %v779_v63 = vpop.permute.xlu0 %778 }
 0xfcf   :  { %v781_v0 = vmul.f32 %v2454_v55, %v779_v63 }
 0xfd1   :  { %v783_v2 = vrot.slane %v781_v0, 2 }
 0xfd3   :  { %784 = vrot.lane.b32.xlu1 %v783_v2, %s2578_s5 }
0x1045   :  { %v785_v4 = vpop.permute.xlu1 %784 }
0x1046   :  { %2289 = vmatmul.mubr.msk.f32.vlgmr.msra.gmra.mxu1 %vm153_vm2, %v785_v4 }
0x1047   :  { %2306 = vmatprep.mubr.msk.f32.mxu1 %vm71_vm0, %v993_v34  ;;  %2303 = vmatpush3.msra.mxu1 %v996_v32 }
0x1048   :  { %2304 = vmatprep.subr.mxu1 %v995_v33 }
0x1049   :  { %2305 = vmatpush3.msra.mxu1 %v995_v33 }
0x104a   :  { %2314 = vmatprep.subr.mxu1 %v2575_v3  ;;  %2307 = vmatmul.mubr.msk.f32.vlgmr.msra.gmra.mxu1 %vm71_vm0, %v994_v35 }
0x104b   :  { %2315 = vmatpush3.msra.mxu1 %v2858_v1  ;;  %2322 = vmatprep.mubr.msk.f32.mxu1 %vm2576_vm1, %v2575_v3 }
0x104c   :  { %2316 = vmatprep.subr.mxu1 %v2575_v3 }
0x104d   :  { %2317 = vmatpush3.msra.mxu1 %v2877_v40 }
0x104e   :  { %2318 = vmatprep.subr.mxu1 %v2575_v3 }
0x104f   :  { %2319 = vmatpush3.msra.mxu1 %v2887_v41 }
0x1050   :  { %2320 = vmatprep.subr.mxu1 %v2575_v3 }
0x1051   :  { %2321 = vmatpush3.msra.mxu1 %v2894_v42 }
0x1052   :  { %2323 = vmatmul.mubr.f32.vlgmr.msra.gmra.mxu1 %v2575_v3  ;;  %2336 = vmatprep.subr.mxu1 %v2575_v3 }
0x1053   :  { %2337 = vmatpush3.msra.mxu1 %v2858_v1  ;;  %2344 = vmatprep.mubr.msk.f32.mxu1 %vm2576_vm1, %v2575_v3 }
0x1054   :  { %2338 = vmatprep.subr.mxu1 %v2575_v3 }
0x1055   :  { %2339 = vmatpush3.msra.mxu1 %v2877_v40 }
0x1056   :  { %2340 = vmatprep.subr.mxu1 %v2575_v3 }
0x1057   :  { %2341 = vmatpush3.msra.mxu1 %v2887_v41 }
0x1058   :  { %2342 = vmatprep.subr.mxu1 %v2575_v3 }
0x1059   :  { %2343 = vmatpush3.msra.mxu1 %v2894_v42 }
0x105a   :  { %2358 = vmatprep.subr.mxu1 %v2575_v3 }
0x1106   :  { %v854_v6 = vpop.f32.mrf.mxu1 }
0x1107   :  { %v859_v9 = vrot.slane %v854_v6, 4 }
0x1108   :  { %v2290_v10 = vpop.f32.mrf.mxu1 }
0x1109   :  { %v861_v12 = vadd.f32 %v859_v9, %v2737_v11  ;;  %v892_v11 = vld [vmem:[%s3085_s6 + $0x18] sm:$0xff] }
0x110a   :  { %2292 = vmatpush3.msra.mxu0 %v892_v11  ;;  %v2925_v48 = vpop.f32.mrf.mxu1 }
0x110b   :  { %2457 = vtanh.f32 %v861_v12  ;;  %v2091_v15 = vmul.f32 -1.442695, %v861_v12  ;;  %2293 = vmatprep.subr.mxu0 %v2575_v3 }
0x110c   :  { %2294 = vmatpush3.msra.mxu0 %v891_v25  ;;  %v2927_v49 = vpop.f32.mrf.mxu1 }
0x110d   :  { %2459 = vpow2.f32 %v2091_v15  ;;  %2295 = vmatprep.subr.mxu0 %v2575_v3 }
0x110e   :  { %2296 = vmatpush3.msra.mxu0 %v890_v26 }
0x110f   :  { %2297 = vmatprep.subr.mxu0 %v2575_v3 }
0x1110   :  { %2298 = vmatpush3.msra.mxu0 %v889_v27 }
0x1111   :  { %2309 = vmatprep.subr.mxu0 %v2575_v3 }
0x1112   :  { %v1227_v50 = vpop.f32.mrf.mxu1 }
0x1114   :  { %v2324_v51 = vpop.f32.mrf.mxu1 }
0x1118   :  { %v2458_v14 = vpop.eup %2457 }
0x1119   :  { %874 = vrot.lane.b32.xlu0 %v2458_v14, %s2577_s23 }
0x111a   :  { %v2460_v16 = vpop.eup %2459 }
0x111b   :  { %v865_v17 = vadd.f32 1.0, %v2460_v16 }
0x111d   :  { %2461 = vrcp.f32 %v865_v17 }
0x112a   :  { %v2462_v18 = vpop.eup %2461 }
0x112b   :  { %v872_v22 = vmul.f32 %v2462_v18, %v870_v21 }
0x118b   :  { %v875_v19 = vpop.permute.xlu0 %874 }
0x118c   :  { %v877_v20 = vmul.f32 %v2462_v18, %v875_v19 }
0x118e   :  { %879 = vrot.lane.b32.xlu1 %v877_v20, %s2578_s5 }
0x1200   :  { %v880_v23 = vpop.permute.xlu1 %879 }
0x1201   :  { %v882_v24 = vadd.f32 %v880_v23, %v872_v22 }
0x1203   :  { %2463 = vtanh.f32 %v882_v24 }
0x1210   :  { %v2464_v28 = vpop.eup %2463 }
0x1211   :  { %885 = vrot.lane.b32.xlu0 %v2464_v28, %s2577_s23 }
0x1283   :  { %v886_v13 = vpop.permute.xlu0 %885 }
0x1284   :  { %v888_v29 = vmul.f32 %v2462_v18, %v886_v13 }
0x1286   :  { %v901_v30 = vrot.slane %v888_v29, 4 }
0x1288   :  { %902 = vrot.lane.b32.xlu1 %v901_v30, %s2578_s5 }
0x12fa   :  { %v903_v31 = vpop.permute.xlu1 %902 }
0x12fb   :  { %2300 = vmatmul.mubr.msk.f32.vlgmr.msra.gmra.mxu0 %vm153_vm2, %v903_v31 }
0x12fc   :  { %2311 = vmatprep.mubr.msk.f32.mxu0 %vm2576_vm1, %v2575_v3  ;;  %2310 = vmatpush3.msra.mxu0 %v1078_v8 }
0x12fd   :  { %2325 = vmatprep.subr.mxu0 %v2575_v3 }
0x13bb   :  { %v972_v37 = vpop.f32.mrf.mxu0 }
0x13bc   :  { %v2869_v5 = vadd.f32 %v2092_v36, %v972_v37 }
0x13bd   :  { %v2301_v38 = vpop.f32.mrf.mxu0 }
0x13be   :  { %v984_v39 = vmul.f32 0.5, %v2869_v5  ;;  %977 = vst.msk [vmem:[#allocation3] sm:$0x3] %vm976_vm3, %v2869_v5 }
0x13c0   :  { %v985_v7 = vmul.f32 1.442695, %v984_v39 }
0x13c2   :  { %2465 = vpow2.f32 %v985_v7 }
0x13cf   :  { %v2466_v43 = vpop.eup %2465 }
0x13d0   :  { %988 = vrot.lane.b32.xlu0 %v2466_v43, %s2579_s9 }
0x1442   :  { %v989_v45 = vpop.permute.xlu0 %988 }
0x1443   :  { %v991_v46 = vmul.f32 %v989_v45, %v983_v44 }
0x1445   :  { %v992_v47 = vadd.f32 %v991_v46, %v2869_v5 }
0x1447   :  { %2312 = vmatmul.mubr.msk.f32.vlgmr.msra.gmra.mxu0 %vm1086_vm4, %v992_v47 }
0x1448   :  { %2326 = vmatpush3.msra.mxu0 %v2858_v1  ;;  %2333 = vmatprep.mubr.msk.f32.mxu0 %vm2576_vm1, %v2575_v3 }
0x1449   :  { %2327 = vmatprep.subr.mxu0 %v2575_v3 }
0x144a   :  { %2328 = vmatpush3.msra.mxu0 %v2877_v40 }
0x144b   :  { %2329 = vmatprep.subr.mxu0 %v2575_v3 }
0x144c   :  { %2330 = vmatpush3.msra.mxu0 %v2887_v41 }
0x144d   :  { %2331 = vmatprep.subr.mxu0 %v2575_v3 }
0x144e   :  { %2332 = vmatpush3.msra.mxu0 %v2894_v42 }
0x144f   :  { %2347 = vmatprep.subr.mxu0 %v2575_v3 }
0x1507   :  { %v1156_v53 = vpop.f32.mrf.mxu0 }
0x1508   :  { %v2932_v54 = vadd.f32 %v2096_v52, %v1156_v53 }
0x1509   :  { %v2313_v55 = vpop.f32.mrf.mxu0 }
0x150a   :  { %v1160_v56 = vadd.f32 %v2932_v54, %v2927_v49  ;;  %v1263_v15 = vrot.slane %v2932_v54, 6  ;;  %v1375_v35 = vrot.slane %v2932_v54, 4 }
0x150c   :  { %v1231_v57 = vadd.f32 %v1227_v50, %v1160_v56  ;;  %v1265_v17 = vadd.f32 %v1263_v15, %v2927_v49  ;;  %v1377_v37 = vadd.f32 %v1375_v35, %v2927_v49 }
0x150e   :  { %2467 = vtanh.f32 %v1231_v57  ;;  %v2098_v59 = vmul.f32 -1.442695, %v1231_v57 }
0x1510   :  { %2469 = vpow2.f32 %v2098_v59 }
0x151b   :  { %v2468_v58 = vpop.eup %2467 }
0x151c   :  { %1241 = vrot.lane.b32.xlu1 %v2468_v58, %s2577_s23 }
0x151d   :  { %v2470_v60 = vpop.eup %2469 }
0x151e   :  { %v1235_v61 = vadd.f32 1.0, %v2470_v60 }
0x1520   :  { %2471 = vrcp.f32 %v1235_v61  ;;  %v1490_v61 = vrot.slane %v2932_v54, 2 }
0x152d   :  { %v2472_v62 = vpop.eup %2471 }
0x152e   :  { %v1239_v2 = vmul.f32 0.0, %v2472_v62 }
0x158e   :  { %v1242_v63 = vpop.permute.xlu1 %1241 }
0x158f   :  { %v1244_v0 = vmul.f32 %v2472_v62, %v1242_v63  ;;  %v1492_v63 = vadd.f32 %v1490_v61, %v2927_v49 }
0x1591   :  { %1246 = vrot.lane.b32.xlu0 %v1244_v0, %s2578_s5 }
0x1603   :  { %v1247_v4 = vpop.permute.xlu0 %1246 }
0x1604   :  { %v1249_v6 = vadd.f32 %v1247_v4, %v1239_v2 }
0x1606   :  { %2473 = vtanh.f32 %v1249_v6  ;;  %v1350_v27 = vrot.slane %v1249_v6, 6 }
0x1613   :  { %v2474_v9 = vpop.eup %2473 }
0x1614   :  { %1252 = vrot.lane.b32.xlu1 %v2474_v9, %s2577_s23 }
0x1686   :  { %v1253_v10 = vpop.permute.xlu1 %1252 }
0x1687   :  { %v1255_v12 = vmul.f32 %v2472_v62, %v1253_v10 }
0x1689   :  { %1257 = vrot.lane.b32.xlu0 %v1255_v12, %s2578_s5 }
0x16fb   :  { %v1258_v14 = vpop.permute.xlu0 %1257 }
0x16fc   :  { %1261 = vst.msk [vmem:[#allocation2] sm:$0x3] %vm1260_vm5, %v1258_v14  ;;  %2334 = vmatmul.mubr.msk.f32.vlgmr.msra.gmra.mxu0 %vm153_vm2, %v1258_v14 }
0x16fd   :  { %2348 = vmatpush3.msra.mxu0 %v2858_v1  ;;  %2355 = vmatprep.mubr.msk.f32.mxu0 %vm2576_vm1, %v2575_v3 }
0x16fe   :  { %2349 = vmatprep.subr.mxu0 %v2575_v3 }
0x16ff   :  { %2350 = vmatpush3.msra.mxu0 %v2877_v40 }
0x1700   :  { %2351 = vmatprep.subr.mxu0 %v2575_v3 }
0x1701   :  { %2352 = vmatpush3.msra.mxu0 %v2887_v41 }
0x1702   :  { %2353 = vmatprep.subr.mxu0 %v2575_v3 }
0x1703   :  { %2354 = vmatpush3.msra.mxu0 %v2894_v42 }
0x1704   :  { %2369 = vmatprep.subr.mxu0 %v2575_v3 }
0x17bc   :  { %v1334_v16 = vpop.f32.mrf.mxu0 }
0x17bd   :  { %v1339_v18 = vrot.slane %v1334_v16, 6 }
0x17be   :  { %v2335_v19 = vpop.f32.mrf.mxu0 }
0x17bf   :  { %v1341_v20 = vadd.f32 %v1339_v18, %v1265_v17 }
0x17c1   :  { %2475 = vtanh.f32 %v1341_v20  ;;  %v2100_v22 = vmul.f32 -1.442695, %v1341_v20 }
0x17c3   :  { %2477 = vpow2.f32 %v2100_v22 }
0x17ce   :  { %v2476_v21 = vpop.eup %2475 }
0x17cf   :  { %1354 = vrot.lane.b32.xlu1 %v2476_v21, %s2577_s23 }
0x17d0   :  { %v2478_v23 = vpop.eup %2477 }
0x17d1   :  { %v1345_v24 = vadd.f32 1.0, %v2478_v23 }
0x17d3   :  { %2479 = vrcp.f32 %v1345_v24 }
0x17e0   :  { %v2480_v11 = vpop.eup %2479 }
0x17e1   :  { %v1352_v28 = vmul.f32 %v2480_v11, %v1350_v27 }
0x1841   :  { %v1355_v25 = vpop.permute.xlu1 %1354 }
0x1842   :  { %v1357_v26 = vmul.f32 %v2480_v11, %v1355_v25  ;;  %v1605_v25 = vadd.f32 %v2925_v48, %v2932_v54 }
0x1844   :  { %1359 = vrot.lane.b32.xlu0 %v1357_v26, %s2578_s5 }
0x18b6   :  { %v1360_v13 = vpop.permute.xlu0 %1359 }
0x18b7   :  { %v1362_v29 = vadd.f32 %v1360_v13, %v1352_v28 }
0x18b9   :  { %2481 = vtanh.f32 %v1362_v29  ;;  %v1465_v51 = vrot.slane %v1362_v29, 6 }
0x18c6   :  { %v2482_v30 = vpop.eup %2481 }
0x18c7   :  { %1365 = vrot.lane.b32.xlu1 %v2482_v30, %s2577_s23 }
0x1939   :  { %v1366_v31 = vpop.permute.xlu1 %1365 }
0x193a   :  { %v2959_v32 = vmul.f32 %v2480_v11, %v1366_v31 }
0x193c   :  { %v1378_v33 = vrot.slane %v2959_v32, 2 }
0x193e   :  { %1379 = vrot.lane.b32.xlu0 %v1378_v33, %s2578_s5 }
0x19b0   :  { %v1380_v34 = vpop.permute.xlu0 %1379 }
0x19b1   :  { %2345 = vmatmul.mubr.msk.f32.vlgmr.msra.gmra.mxu1 %vm153_vm2, %v1380_v34 }
0x19b2   :  { %2359 = vmatpush3.msra.mxu1 %v2858_v1  ;;  %2366 = vmatprep.mubr.msk.f32.mxu1 %vm2576_vm1, %v2575_v3 }
0x19b3   :  { %2360 = vmatprep.subr.mxu1 %v2575_v3 }
0x19b4   :  { %2361 = vmatpush3.msra.mxu1 %v2877_v40 }
0x19b5   :  { %2362 = vmatprep.subr.mxu1 %v2575_v3 }
0x19b6   :  { %2363 = vmatpush3.msra.mxu1 %v2887_v41 }
0x19b7   :  { %2364 = vmatprep.subr.mxu1 %v2575_v3 }
0x19b8   :  { %2365 = vmatpush3.msra.mxu1 %v2894_v42 }
0x19b9   :  { %2380 = vmatprep.subr.mxu1 %v2575_v3 }
0x1a71   :  { %v1449_v36 = vpop.f32.mrf.mxu1 }
0x1a72   :  { %v1454_v38 = vrot.slane %v1449_v36, 4 }
0x1a73   :  { %v2346_v39 = vpop.f32.mrf.mxu1 }
0x1a74   :  { %v1456_v7 = vadd.f32 %v1454_v38, %v1377_v37 }
0x1a76   :  { %2483 = vtanh.f32 %v1456_v7  ;;  %v2102_v43 = vmul.f32 -1.442695, %v1456_v7 }
0x1a78   :  { %2485 = vpow2.f32 %v2102_v43 }
0x1a83   :  { %v2484_v8 = vpop.eup %2483 }
0x1a84   :  { %1469 = vrot.lane.b32.xlu1 %v2484_v8, %s2577_s23  ;;  %v1714_v8 = vadd.f32 %v2925_v48, %v1263_v15 }
0x1a85   :  { %v2486_v44 = vpop.eup %2485 }
0x1a86   :  { %v1460_v45 = vadd.f32 1.0, %v2486_v44 }
0x1a88   :  { %2487 = vrcp.f32 %v1460_v45 }
0x1a95   :  { %v2488_v46 = vpop.eup %2487 }
0x1a96   :  { %v1467_v52 = vmul.f32 %v2488_v46, %v1465_v51 }
0x1af6   :  { %v1470_v47 = vpop.permute.xlu1 %1469 }
0x1af7   :  { %v1472_v50 = vmul.f32 %v2488_v46, %v1470_v47 }
0x1af9   :  { %1474 = vrot.lane.b32.xlu0 %v1472_v50, %s2578_s5 }
0x1b6b   :  { %v1475_v53 = vpop.permute.xlu0 %1474 }
0x1b6c   :  { %v1477_v55 = vadd.f32 %v1475_v53, %v1467_v52 }
0x1b6e   :  { %2489 = vtanh.f32 %v1477_v55  ;;  %v1580_v18 = vrot.slane %v1477_v55, 6 }
0x1b7b   :  { %v2490_v56 = vpop.eup %2489 }
0x1b7c   :  { %1480 = vrot.lane.b32.xlu1 %v2490_v56, %s2577_s23 }
0x1bee   :  { %v1481_v57 = vpop.permute.xlu1 %1480 }
0x1bef   :  { %v2981_v58 = vmul.f32 %v2488_v46, %v1481_v57 }
0x1bf1   :  { %v1493_v59 = vrot.slane %v2981_v58, 4 }
0x1bf3   :  { %1494 = vrot.lane.b32.xlu0 %v1493_v59, %s2578_s5 }
0x1c65   :  { %v1495_v60 = vpop.permute.xlu0 %1494 }
0x1c66   :  { %2356 = vmatmul.mubr.msk.f32.vlgmr.msra.gmra.mxu0 %vm153_vm2, %v1495_v60 }
0x1c67   :  { %2370 = vmatpush3.msra.mxu0 %v2858_v1  ;;  %2377 = vmatprep.mubr.msk.f32.mxu0 %vm2576_vm1, %v2575_v3 }
0x1c68   :  { %2371 = vmatprep.subr.mxu0 %v2575_v3 }
0x1c69   :  { %2372 = vmatpush3.msra.mxu0 %v2877_v40 }
0x1c6a   :  { %2373 = vmatprep.subr.mxu0 %v2575_v3 }
0x1c6b   :  { %2374 = vmatpush3.msra.mxu0 %v2887_v41 }
0x1c6c   :  { %2375 = vmatprep.subr.mxu0 %v2575_v3 }
0x1c6d   :  { %2376 = vmatpush3.msra.mxu0 %v2894_v42 }
0x1d26   :  { %v1564_v62 = vpop.f32.mrf.mxu0 }
0x1d27   :  { %v1569_v0 = vrot.slane %v1564_v62, 2 }
0x1d28   :  { %v2357_v2 = vpop.f32.mrf.mxu0 }
0x1d29   :  { %v1571_v4 = vadd.f32 %v1569_v0, %v1492_v63 }
0x1d2b   :  { %2491 = vtanh.f32 %v1571_v4  ;;  %v2104_v9 = vmul.f32 -1.442695, %v1571_v4  ;;  %v1823_v4 = vadd.f32 %v2925_v48, %v1375_v35 }
0x1d2d   :  { %2493 = vpow2.f32 %v2104_v9 }
0x1d38   :  { %v2492_v6 = vpop.eup %2491 }
0x1d39   :  { %1584 = vrot.lane.b32.xlu1 %v2492_v6, %s2577_s23 }
0x1d3a   :  { %v2494_v10 = vpop.eup %2493 }
0x1d3b   :  { %v1575_v12 = vadd.f32 1.0, %v2494_v10 }
0x1d3d   :  { %2495 = vrcp.f32 %v1575_v12 }
0x1d4a   :  { %v2496_v14 = vpop.eup %2495 }
0x1d4b   :  { %v1582_v19 = vmul.f32 %v2496_v14, %v1580_v18 }
0x1dab   :  { %v1585_v16 = vpop.permute.xlu1 %1584 }
0x1dac   :  { %v1587_v17 = vmul.f32 %v2496_v14, %v1585_v16 }
0x1dae   :  { %1589 = vrot.lane.b32.xlu0 %v1587_v17, %s2578_s5 }
0x1e20   :  { %v1590_v49 = vpop.permute.xlu0 %1589 }
0x1e21   :  { %v1592_v20 = vadd.f32 %v1590_v49, %v1582_v19 }
0x1e23   :  { %2497 = vtanh.f32 %v1592_v20 }
0x1e30   :  { %v2498_v21 = vpop.eup %2497 }
0x1e31   :  { %1595 = vrot.lane.b32.xlu1 %v2498_v21, %s2577_s23 }
0x1ea3   :  { %v1596_v22 = vpop.permute.xlu1 %1595 }
0x1ea4   :  { %v3000_v23 = vmul.f32 %v2496_v14, %v1596_v22 }
0x1ea6   :  { %v1606_v24 = vrot.slane %v3000_v23, 6 }
0x1ea8   :  { %1607 = vrot.lane.b32.xlu0 %v1606_v24, %s2578_s5 }
0x1f1a   :  { %v1608_v11 = vpop.permute.xlu0 %1607 }
0x1f1b   :  { %2367 = vmatmul.mubr.msk.f32.vlgmr.msra.gmra.mxu1 %vm153_vm2, %v1608_v11  ;;  %v1938_v11 = vld [vmem:[%s3091_s12 + $0x8] sm:$0xff] }
0x1f1c   :  { %2381 = vmatpush3.msra.mxu1 %v2858_v1  ;;  %2388 = vmatprep.mubr.msk.f32.mxu1 %vm2576_vm1, %v2575_v3 }
0x1f1d   :  { %2382 = vmatprep.subr.mxu1 %v2575_v3 }
0x1f1e   :  { %2383 = vmatpush3.msra.mxu1 %v2877_v40 }
0x1f1f   :  { %2384 = vmatprep.subr.mxu1 %v2575_v3 }
0x1f20   :  { %2385 = vmatpush3.msra.mxu1 %v2887_v41 }
0x1f21   :  { %2386 = vmatprep.subr.mxu1 %v2575_v3 }
0x1f22   :  { %2387 = vmatpush3.msra.mxu1 %v2894_v42  ;;  %v1690_v42 = vrot.slane %v1592_v20, 6 }
0x1fdb   :  { %v1677_v26 = vpop.f32.mrf.mxu1 }
0x1fdc   :  { %v1681_v1 = vadd.f32 %v1677_v26, %v1605_v25 }
0x1fdd   :  { %v2368_v27 = vpop.f32.mrf.mxu1 }
0x1fde   :  { %2499 = vtanh.f32 %v1681_v1  ;;  %v2106_v13 = vmul.f32 -1.442695, %v1681_v1 }
0x1fe0   :  { %2501 = vpow2.f32 %v2106_v13 }
0x1feb   :  { %v2500_v28 = vpop.eup %2499 }
0x1fec   :  { %1694 = vrot.lane.b32.xlu1 %v2500_v28, %s2577_s23 }
0x1fed   :  { %v2502_v40 = vpop.eup %2501 }
0x1fee   :  { %v1685_v29 = vadd.f32 1.0, %v2502_v40 }
0x1ff0   :  { %2503 = vrcp.f32 %v1685_v29 }
0x1ffd   :  { %v2504_v41 = vpop.eup %2503 }
0x1ffe   :  { %v1692_v31 = vmul.f32 %v2504_v41, %v1690_v42 }
0x205e   :  { %v1695_v30 = vpop.permute.xlu1 %1694 }
0x205f   :  { %v1697_v3 = vmul.f32 %v2504_v41, %v1695_v30 }
0x2061   :  { %1699 = vrot.lane.b32.xlu0 %v1697_v3, %s2578_s5 }
0x20d3   :  { %v1700_v33 = vpop.permute.xlu0 %1699 }
0x20d4   :  { %v1702_v34 = vadd.f32 %v1700_v33, %v1692_v31 }
0x20d6   :  { %2505 = vtanh.f32 %v1702_v34  ;;  %v1799_v56 = vrot.slane %v1702_v34, 6 }
0x20e3   :  { %v2506_v36 = vpop.eup %2505 }
0x20e4   :  { %1705 = vrot.lane.b32.xlu1 %v2506_v36, %s2577_s23 }
0x2156   :  { %v1706_v37 = vpop.permute.xlu1 %1705 }
0x2157   :  { %v1708_v38 = vmul.f32 %v2504_v41, %v1706_v37 }
0x2159   :  { %1710 = vrot.lane.b32.xlu0 %v1708_v38, %s2578_s5 }
0x21cb   :  { %v1711_v39 = vpop.permute.xlu0 %1710 }
0x21cc   :  { %1713 = vst.msk [vmem:[#allocation2 + $0x8] sm:$0x3] %vm1260_vm5, %v1711_v39  ;;  %2378 = vmatmul.mubr.msk.f32.vlgmr.msra.gmra.mxu0 %vm153_vm2, %v1711_v39 }
0x228c   :  { %v1783_v7 = vpop.f32.mrf.mxu0 }
0x228d   :  { %v1788_v43 = vrot.slane %v1783_v7, 6 }
0x228e   :  { %v2379_v44 = vpop.f32.mrf.mxu0 }
0x228f   :  { %v1790_v45 = vadd.f32 %v1788_v43, %v1714_v8 }
0x2291   :  { %2507 = vtanh.f32 %v1790_v45  ;;  %v2108_v47 = vmul.f32 -1.442695, %v1790_v45 }
0x2293   :  { %2509 = vpow2.f32 %v2108_v47 }
0x229e   :  { %v2508_v46 = vpop.eup %2507 }
0x229f   :  { %1803 = vrot.lane.b32.xlu1 %v2508_v46, %s2577_s23 }
0x22a0   :  { %v2510_v50 = vpop.eup %2509 }
0x22a1   :  { %v1794_v51 = vadd.f32 1.0, %v2510_v50 }
0x22a3   :  { %2511 = vrcp.f32 %v1794_v51 }
0x22b0   :  { %v2512_v52 = vpop.eup %2511 }
0x22b1   :  { %v1801_v57 = vmul.f32 %v2512_v52, %v1799_v56 }
0x2311   :  { %v1804_v53 = vpop.permute.xlu1 %1803 }
0x2312   :  { %v1806_v55 = vmul.f32 %v2512_v52, %v1804_v53 }
0x2314   :  { %1808 = vrot.lane.b32.xlu0 %v1806_v55, %s2578_s5 }
0x2386   :  { %v1809_v15 = vpop.permute.xlu0 %1808 }
0x2387   :  { %v1811_v59 = vadd.f32 %v1809_v15, %v1801_v57 }
0x2389   :  { %2513 = vtanh.f32 %v1811_v59  ;;  %v1911_v48 = vrot.slane %v1811_v59, 6 }
0x2396   :  { %v2514_v60 = vpop.eup %2513 }
0x2397   :  { %1814 = vrot.lane.b32.xlu1 %v2514_v60, %s2577_s23 }
0x2409   :  { %v1815_v61 = vpop.permute.xlu1 %1814 }
0x240a   :  { %v1817_v62 = vmul.f32 %v2512_v52, %v1815_v61 }
0x240c   :  { %v1824_v63 = vrot.slane %v1817_v62, 2 }
0x240e   :  { %1825 = vrot.lane.b32.xlu0 %v1824_v63, %s2578_s5 }
0x2480   :  { %v1826_v0 = vpop.permute.xlu0 %1825 }
0x2481   :  { %2389 = vmatmul.mubr.msk.f32.vlgmr.msra.gmra.mxu1 %vm153_vm2, %v1826_v0 }
0x2541   :  { %v1895_v2 = vpop.f32.mrf.mxu1 }
0x2542   :  { %v1900_v6 = vrot.slane %v1895_v2, 4 }
0x2543   :  { %v2390_v9 = vpop.f32.mrf.mxu1 }
0x2544   :  { %v1902_v10 = vadd.f32 %v1900_v6, %v1823_v4 }
0x2546   :  { %2515 = vtanh.f32 %v1902_v10  ;;  %v2110_v14 = vmul.f32 -1.442695, %v1902_v10 }
0x2548   :  { %2517 = vpow2.f32 %v2110_v14 }
0x2553   :  { %v2516_v12 = vpop.eup %2515 }
0x2554   :  { %1915 = vrot.lane.b32.xlu1 %v2516_v12, %s2577_s23 }
0x2555   :  { %v2518_v16 = vpop.eup %2517 }
0x2556   :  { %v1906_v17 = vadd.f32 1.0, %v2518_v16 }
0x2558   :  { %2519 = vrcp.f32 %v1906_v17 }
0x2565   :  { %v2520_v18 = vpop.eup %2519 }
0x2566   :  { %v1913_v54 = vmul.f32 %v2520_v18, %v1911_v48 }
0x25c6   :  { %v1916_v19 = vpop.permute.xlu1 %1915 }
0x25c7   :  { %v1918_v49 = vmul.f32 %v2520_v18, %v1916_v19 }
0x25c9   :  { %1920 = vrot.lane.b32.xlu0 %v1918_v49, %s2578_s5 }
0x25cd   :  { %1370 = vrot.lane.b32.xlu0 %v2959_v32, %s2578_s5  ;;  %v1940_v32 = vld [vmem:[%s3091_s12 + $0x18] sm:$0xff] }
0x25ce   :  { %2391 = vmatprep.subr.mxu0 %v1940_v32 }
0x25cf   :  { %2392 = vmatpush3.msra.mxu0 %v1940_v32 }
0x25d1   :  { %1600 = vrot.lane.b32.xlu0 %v3000_v23, %s2578_s5  ;;  %v1939_v23 = vld [vmem:[%s3091_s12 + $0x10] sm:$0xff] }
0x25d2   :  { %2393 = vmatprep.subr.mxu0 %v1939_v23 }
0x25d3   :  { %2394 = vmatpush3.msra.mxu0 %v1939_v23 }
0x25d4   :  { %2395 = vmatprep.subr.mxu0 %v1938_v11 }
0x25d5   :  { %2396 = vmatpush3.msra.mxu0 %v1938_v11 }
0x263b   :  { %v1921_v35 = vpop.permute.xlu0 %1920 }
0x263c   :  { %v1923_v20 = vadd.f32 %v1921_v35, %v1913_v54 }
0x263e   :  { %2521 = vtanh.f32 %v1923_v20 }
0x263f   :  { %v1371_v21 = vpop.permute.xlu0 %1370 }
0x2640   :  { %1374 = vst.msk [vmem:[#allocation2] sm:$0xc] %vm1373_vm6, %v1371_v21 }
0x2643   :  { %v1601_v22 = vpop.permute.xlu0 %1600 }
0x2644   :  { %1604 = vst.msk [vmem:[#allocation2] sm:$0xc0] %vm1603_vm7, %v1601_v22 }
0x264b   :  { %v2522_v24 = vpop.eup %2521 }
0x264c   :  { %1926 = vrot.lane.b32.xlu1 %v2522_v24, %s2577_s23 }
0x2650   :  { %1485 = vrot.lane.b32.xlu1 %v2981_v58, %s2578_s5 }
0x2654   :  { %1819 = vrot.lane.b32.xlu1 %v1817_v62, %s2578_s5 }
0x2658   :  { %979 = vrot.lane.b32.xlu1 %v2869_v5, %s2579_s9  ;;  %v1937_v5 = vld [vmem:[%s3091_s12] sm:$0xff]  ;;  %s2580_s12 = smov [#allocation3]  }
0x2659   :  { %2397 = vmatprep.subr.mxu0 %v1937_v5  ;;  %s2052_s22 = sshll.u32 %s2580_s12, 4  ;;  %s2053_s22 = int_to_ptr.vmem [resolvable:$true] %s2052_s22 }
0x265a   :  { %2398 = vmatpush3.msra.mxu0 %v1937_v5  ;;  %s2531_s8 = scalar_lea.vmem %s2053_s22, 32  ;;  %p2536_p1 = scmp.lt.s32.totalorder %s2053_s22, %s2053_s22 }
0x265b   :  { %p2532_p0 = scmp.ne.s32.totalorder %s2053_s22, %s2531_s8  ;;  %p2537_p2 = scmp.lt.s32.totalorder %s2531_s8, %s2531_s8 }
0x265d   :  { %p2538_p3 = por %p2537_p2, %p2536_p1 }
0x265f   :  { %p2539_p4 = pnand %p2538_p3, %p2532_p0 }
0x26be   :  { %v1927_v58 = vpop.permute.xlu1 %1926 }
0x26bf   :  { %v1929_v25 = vmul.f32 %v2520_v18, %v1927_v58 }
0x26c1   :  { %1931 = vrot.lane.b32.xlu0 %v1929_v25, %s2578_s5  ;;  %s2062_s5 = sshll.u32 %s2581_s24, 4  ;;  %s2063_s5 = int_to_ptr.vmem [resolvable:$true] %s2062_s5 }
0x26c2   :  { %v1486_v26 = vpop.permute.xlu1 %1485 }
0x26c3   :  { %1489 = vst.msk [vmem:[#allocation2] sm:$0x30] %vm1488_vm8, %v1486_v26 }
0x26c6   :  { %v1820_v1 = vpop.permute.xlu1 %1819 }
0x26c7   :  { %1822 = vst.msk [vmem:[#allocation2 + $0x8] sm:$0xc] %vm1373_vm6, %v1820_v1 }
0x26ca   :  { %v980_v27 = vpop.permute.xlu1 %979  ;;  %v1935_v28 = vld [vmem:[#allocation2] sm:$0xff] }
0x26cb   :  { %982 = vst.msk [vmem:[#allocation5] sm:$0x3] %vm976_vm3, %v980_v27  ;;  %2399 = vmatprep.mubr.msk.f32.mxu0 %vm153_vm2, %v1935_v28 }
0x2733   :  { %v1932_v13 = vpop.permute.xlu0 %1931 }
0x2734   :  { %1934 = vst.msk [vmem:[#allocation2 + $0x8] sm:$0x30] %vm1488_vm8, %v1932_v13 }
0x273b   :  { %v1936_v40 = vld [vmem:[#allocation2 + $0x8] sm:$0x3f] }
0x273c   :  { %2400 = vmatmul.mubr.msk.f32.vlgmr.msra.gmra.mxu0 %vm153_vm2, %v1936_v40 }
0x273d   :  { %2542 = shalt.err (!%p2539_p4)
}
0x273e   :  { %2055 = dma.vmem_to_hbm [thread:$0]  %s2053_s22, 32, %s3094_s15, [#allocation4]  }
0x273f   :  { %s2551_s26 = scalar_lea.vmem %s2063_s5, 32  ;;  %p2556_p6 = scmp.lt.s32.totalorder %s2063_s5, %s2063_s5 }
0x2740   :  { %p2552_p5 = scmp.ne.s32.totalorder %s2063_s5, %s2551_s26  ;;  %p2557_p7 = scmp.lt.s32.totalorder %s2551_s26, %s2551_s26 }
0x2742   :  { %p2558_p8 = por %p2557_p7, %p2556_p6 }
0x2744   :  { %p2559_p9 = pnand %p2558_p8, %p2552_p5 }
0x2746   :  { %2562 = shalt.err (!%p2559_p9)
}
0x2747   :  { %2065 = dma.vmem_to_hbm [thread:$0]  %s2063_s5, 32, %s3095_s16, [#allocation6]   ;;  %v2111_v29 = vld [vmem:[%s3092_s13] ss:$0 sm:$0xff]  ;;  %vm2042_vm9 = vcmask 128000  }
0x27fc   :  { %v2401_v41 = vpop.f32.mrf.mxu0 }
0x27fd   :  { %v2026_v30 = vadd.f32 %v2401_v41, %v2111_v29 }
0x27fe   :  { %v2020_v3 = vpop.f32.mrf.mxu0 }
0x27ff   :  { %v2115_v42 = vmul.f32 -1.442695, %v2026_v30  ;;  %v2021_v31 = vadd.f32 %v2111_v29, %v2020_v3 }
0x2801   :  { %2523 = vpow2.f32 %v2115_v42  ;;  %v2114_v33 = vmul.f32 -1.442695, %v2021_v31 }
0x2803   :  { %2525 = vpow2.f32 %v2114_v33 }
0x280e   :  { %v2524_v34 = vpop.eup %2523 }
0x280f   :  { %v2036_v36 = vadd.f32 1.0, %v2524_v34 }
0x2810   :  { %v2526_v37 = vpop.eup %2525 }
0x2811   :  { %2527 = vrcp.f32 %v2036_v36  ;;  %v2035_v38 = vadd.f32 1.0, %v2526_v37 }
0x2813   :  { %2529 = vrcp.f32 %v2035_v38 }
0x281e   :  { %v2528_v39 = vpop.eup %2527 }
0x281f   :  { %2043 = vst.msk [vmem:[%s3093_s14 + $0x8] sm:$0x3f] %vm2042_vm9, %v2528_v39 }
0x2820   :  { %v2530_v7 = vpop.eup %2529 }
0x2821   :  { %2041 = vst.msk [vmem:[%s3093_s14] sm:$0xff] %vm71_vm0, %v2530_v7 }
0x2822   :  { %2571 = dma.done.wait [#allocation4], 32  }
0x2823   :  { %2572 = vsyncadd [#allocation4], 4294967264 }
0x2824   :  { %2573 = dma.done.wait [#allocation6], 32  }
0x2825   :  { %2574 = vsyncadd [#allocation6], 4294967264 }
0x2826   :  { %2074 = vsyncpa [#allocation4], 1 }
0x2827   :  { %2075 = vsyncpa [#allocation6], 1 }

</bundles_post_ra>
